<compile_context>
chip_gen: v6e
topology: v6e:2x2x1
jax: 0.10.0
libtpu: 0.0.40
codegen_flags: <defaults>
</compile_context>

<pallas_src>
import functools

import jax
import jax.numpy as jnp
from jax import lax
from jax.experimental import pallas as pl
from jax.experimental.pallas import tpu as pltpu


def _vmem_limit_bytes():
    # v5e/v6e: 128 MiB physical VMEM -> ~96 MiB scoped; v7x: 64 MiB/TC -> ~48 MiB.
    try:
        cap = pltpu.get_tpu_info().vmem_capacity_bytes
    except Exception:
        cap = 64 << 20
    return max(32 << 20, min(int(cap) * 3 // 4, 100 << 20))


# --------------------------------------------------------------------------
# Kernel A: direct 3x3 conv (no bias) + per-conv-channel sum / sumsq
# --------------------------------------------------------------------------
def _conv_stats_kernel(x_ref, w_ref, y_ref, s_ref, q_ref, lhs_ref):
    # x_ref:   (1, TH+2, W+2, C)  haloed NHWC input row-tile (compute dtype)
    # w_ref:   (9*C, Cout)        fused-tap weight matrix (compute dtype)
    # y_ref:   (1, TH*W, Cout)    raw conv output tile (compute dtype)
    # s_ref, q_ref: (1, 1, Cout)  f32 partial sums for the BN batch statistics
    # lhs_ref: (TH*W, 9*C)        VMEM scratch holding the im2col operand
    Hp, Wp, C = x_ref.shape[1], x_ref.shape[2], x_ref.shape[3]
    TH, W = Hp - 2, Wp - 2
    M = TH * W

    # Build the (M, 9C) operand ONCE: each tap slice is copied exactly once
    # (halo stays in VMEM), then a single K=9C matmul fills the MXU depth.
    for kh in range(3):
        for kw in range(3):
            t0 = (kh * 3 + kw) * C
            lhs_ref[:, t0:t0 + C] = (
                x_ref[0, kh:kh + TH, kw:kw + W, :].reshape(M, C))

    acc = jnp.dot(lhs_ref[...], w_ref[...], preferred_element_type=jnp.float32)

    y_ref[0] = acc.astype(y_ref.dtype)
    s_ref[0] = jnp.sum(acc, axis=0, keepdims=True)
    q_ref[0] = jnp.sum(acc * acc, axis=0, keepdims=True)


def _pick_h_tile(H, W, C, Cout, itemsize, vmem_budget, n_batch, min_steps=4):
    """Largest divisor TH of H whose per-step VMEM footprint fits the budget;
    then shrink (keeping tiles >= 128 rows) until the grid has >= min_steps
    blocks so pipelining / megacore sharding have work to overlap."""
    def tile_bytes(th):
        m = th * W
        return (m * 9 * C * itemsize                     # im2col scratch (x1)
                + m * Cout * 4                           # f32 accumulator
                + 2 * (th + 2) * (W + 2) * C * itemsize  # haloed input x2 bufs
                + 2 * m * Cout * itemsize                # conv output x2 bufs
                + 2 * 9 * C * Cout * itemsize)           # weights x2 bufs
    divs = sorted((d for d in range(1, H + 1) if H % d == 0), reverse=True)
    th = next((d for d in divs if tile_bytes(d) <= vmem_budget), 1)
    while n_batch * (H // th) < min_steps:
        smaller = [d for d in divs if d < th]
        if not smaller or smaller[0] * W < 128:
            break
        th = smaller[0]
    return th


def _conv3x3_with_stats(xt, w2, out_dtype, vmem_limit):
    G, Hp, Wp, C = xt.shape           # G = N * (H // TH)
    TH, W = Hp - 2, Wp - 2
    M = TH * W
    Cout = w2.shape[-1]

    flops = 2 * G * M * 9 * C * Cout
    bytes_acc = (xt.size * xt.dtype.itemsize
                 + w2.size * w2.dtype.itemsize
                 + G * M * Cout * jnp.dtype(out_dtype).itemsize
                 + 2 * G * Cout * 4)

    return pl.pallas_call(
        _conv_stats_kernel,
        out_shape=(
            jax.ShapeDtypeStruct((G, M, Cout), out_dtype),
            jax.ShapeDtypeStruct((G, 1, Cout), jnp.float32),
            jax.ShapeDtypeStruct((G, 1, Cout), jnp.float32),
        ),
        grid_spec=pltpu.PrefetchScalarGridSpec(
            num_scalar_prefetch=0,
            grid=(G,),
            in_specs=[
                pl.BlockSpec((1, Hp, Wp, C), lambda g: (g, 0, 0, 0)),
                # TODO(synk): single-buffer this constant block
                # (pipeline_mode=pl.Buffered(1)) to reclaim one weight copy of VMEM.
                pl.BlockSpec((9 * C, Cout), lambda g: (0, 0)),
            ],
            out_specs=[
                pl.BlockSpec((1, M, Cout), lambda g: (g, 0, 0)),
                pl.BlockSpec((1, 1, Cout), lambda g: (g, 0, 0)),
                pl.BlockSpec((1, 1, Cout), lambda g: (g, 0, 0)),
            ],
            scratch_shapes=[pltpu.VMEM((M, 9 * C), xt.dtype)],
        ),
        compiler_params=pltpu.CompilerParams(
            dimension_semantics=("parallel",),
            vmem_limit_bytes=vmem_limit),
        cost_estimate=pl.CostEstimate(
            flops=flops, transcendentals=0, bytes_accessed=bytes_acc),
    )(xt, w2)


# --------------------------------------------------------------------------
# Kernel B: fused BN-apply (per-conv-channel affine) + ReLU, fixed row tiles
# --------------------------------------------------------------------------
def _bn_relu_kernel(y_ref, a_ref, b_ref, o_ref):
    y = y_ref[...].astype(jnp.float32)
    o_ref[...] = jnp.maximum(y * a_ref[...] + b_ref[...], 0.0).astype(o_ref.dtype)


def _pick_row_tile(M, Cout, itemsize, target_bytes=1 << 20, max_rows=4096):
    """Fixed ~1 MiB row tile (multiple of 8 rows); cdiv grid handles the tail.
    Keeps >= 2 blocks when possible so v7x megacore gets work."""
    row_bytes = max(1, Cout * itemsize)
    tm = (target_bytes // row_bytes) // 8 * 8
    tm = max(8, min(max_rows, tm))
    if M > 16 and 2 * tm > M:
        tm = max(8, (M // 2) // 8 * 8)
    return tm


def _bn_relu_apply(y2d, a_row, b_row, out_dtype, vmem_limit):
    M, Cout = y2d.shape
    itemsize = max(y2d.dtype.itemsize, jnp.dtype(out_dtype).itemsize)
    tm = _pick_row_tile(M, Cout, itemsize)
    grid = pl.cdiv(M, tm)

    flops = 3 * M * Cout
    bytes_acc = (M * Cout * (y2d.dtype.itemsize + jnp.dtype(out_dtype).itemsize)
                 + 2 * Cout * 4)

    return pl.pallas_call(
        _bn_relu_kernel,
        out_shape=jax.ShapeDtypeStruct((M, Cout), out_dtype),
        grid_spec=pltpu.PrefetchScalarGridSpec(
            num_scalar_prefetch=0,
            grid=(grid,),
            in_specs=[
                pl.BlockSpec((tm, Cout), lambda i: (i, 0)),
                pl.BlockSpec((1, Cout), lambda i: (0, 0)),
                pl.BlockSpec((1, Cout), lambda i: (0, 0)),
            ],
            out_specs=pl.BlockSpec((tm, Cout), lambda i: (i, 0)),
        ),
        compiler_params=pltpu.CompilerParams(
            dimension_semantics=("parallel",),
            vmem_limit_bytes=vmem_limit),
        cost_estimate=pl.CostEstimate(
            flops=flops, transcendentals=0, bytes_accessed=bytes_acc),
    )(y2d, a_row, b_row)


# --------------------------------------------------------------------------
# Up forward: conv3x3 -> pixel shuffle -> BN (training batch stats) -> ReLU
# --------------------------------------------------------------------------
@functools.partial(jax.jit, static_argnames=("scale", "compute_dtype", "eps"))
def up_forward(x, conv_w, conv_b, bn_gamma, bn_beta, *, scale,
               compute_dtype=jnp.float32, eps=1e-5):
    """x: (N, C, H, W); conv_w: (C*r*r, C, 3, 3) OIHW; conv_b: (C*r*r,);
    bn_gamma / bn_beta: (C,)."""
    N, C, H, W = x.shape
    r = scale
    Cout = C * r * r
    cdt = jnp.dtype(compute_dtype)
    vmem_limit = _vmem_limit_bytes()

    # ---- prep (XLA, smallest tensor): NCHW -> padded NHWC -> haloed row tiles
    TH = _pick_h_tile(H, W, C, Cout, cdt.itemsize,
                      vmem_budget=int(0.8 * vmem_limit), n_batch=N)
    nH = H // TH
    xp = jnp.pad(x.transpose(0, 2, 3, 1).astype(cdt),
                 ((0, 0), (1, 1), (1, 1), (0, 0)))
    # Haloed row tiles are materialised once in HBM ((TH+2)/TH overhead on the
    # *smallest* tensor) so Kernel A needs only plain Blocked specs.
    # TODO(synk): zero-copy alternative for very large inputs: pl.Element
    # offset index_map (or a manual double-buffered DMA) over the padded image.
    xt = jnp.stack([xp[:, i * TH:i * TH + TH + 2] for i in range(nH)], axis=1)
    xt = xt.reshape(N * nH, TH + 2, W + 2, C)

    # OIHW -> fused (9*C, Cout) matrix, preserving PyTorch output-channel order.
    w2 = conv_w.transpose(2, 3, 1, 0).reshape(9 * C, Cout).astype(cdt)

    # Kernel A: conv (bias deferred) + per-conv-channel sum / sumsq.
    y_raw, s_part, q_part = _conv3x3_with_stats(xt, w2, cdt, vmem_limit)

    # --- tiny scalar glue: BN batch stats with the bias folded in analytically
    cb = conv_b.astype(jnp.float32)
    n_cc = jnp.float32(N * H * W)                 # samples per conv channel
    s_cc = jnp.sum(s_part, axis=(0, 1))           # (Cout,) sum of raw conv
    q_cc = jnp.sum(q_part, axis=(0, 1))           # (Cout,) sum of raw conv^2
    # TODO(synk): for very large N*H*W use centered/compensated accumulation;
    # plain E[x^2]-mean^2 can cancel badly when |mean| >> std.
    s_b = s_cc + n_cc * cb                        # stats of conv + bias
    q_b = q_cc + 2.0 * cb * s_cc + n_cc * cb * cb
    cnt = n_cc * (r * r)                          # samples per BN channel
    mean_c = jnp.sum(s_b.reshape(C, r * r), axis=1) / cnt
    ex2_c = jnp.sum(q_b.reshape(C, r * r), axis=1) / cnt
    var_c = jnp.maximum(ex2_c - mean_c * mean_c, 0.0)   # biased var (BN fwd)
    scale_c = bn_gamma.astype(jnp.float32) * lax.rsqrt(var_c + eps)
    shift_c = bn_beta.astype(jnp.float32) - mean_c * scale_c
    # per-conv-channel affine:  y_bn = (y_raw + b)*scale_c + shift_c
    a_cc = jnp.repeat(scale_c, r * r)                       # (Cout,)
    b_cc = jnp.repeat(shift_c, r * r) + cb * a_cc           # bias folded in
    a_cc = a_cc.reshape(1, Cout)
    b_cc = b_cc.reshape(1, Cout)

    # Kernel B: fused BN-apply + ReLU on the pre-shuffle (M, Cout) layout,
    # written in the compute dtype (no f32 round trip on the bf16 path).
    out_flat = _bn_relu_apply(y_raw.reshape(N * H * W, Cout), a_cc, b_cc,
                              cdt, vmem_limit)

    # PixelShuffle(r): conv channel c*r*r + i*r + j -> (c, h*r+i, w*r+j).
    # TODO(synk): fold this layout pass into Kernel B's out_specs (write NCHW
    # (1,C,TH*r,W*r) blocks directly) once the in-VMEM Cout->(C,r,r) reshuffle
    # is worth the XLU relayout.
    out = out_flat.reshape(N, H, W, C, r, r)
    out = out.transpose(0, 3, 1, 4, 2, 5).reshape(N, C, H * r, W * r)
    return out.astype(x.dtype)


# --------------------------------------------------------------------------
# Pure-JAX reference (sanity check)
# --------------------------------------------------------------------------
def up_reference(x, conv_w, conv_b, bn_gamma, bn_beta, *, scale):
    N, C, H, W = x.shape
    r = scale
    y = lax.conv_general_dilated(
        x, conv_w, window_strides=(1, 1), padding=((1, 1), (1, 1)),
        dimension_numbers=("NCHW", "OIHW", "NCHW"))
    y = y + conv_b.reshape(1, -1, 1, 1)
    y = y.reshape(N, C, r, r, H, W).transpose(0, 1, 4, 2, 5, 3).reshape(
        N, C, H * r, W * r)
    mean = y.mean(axis=(0, 2, 3), keepdims=True)
    var = ((y - mean) ** 2).mean(axis=(0, 2, 3), keepdims=True)
    y = (y - mean) / jnp.sqrt(var + 1e-5)
    y = y * bn_gamma.reshape(1, -1, 1, 1) + bn_beta.reshape(1, -1, 1, 1)
    return jnp.maximum(y, 0.0)


if __name__ == "__main__":
    key = jax.random.PRNGKey(0)
    n_feats, scale = 4, 2
    N, H, W = 2, 16, 16

    k1, k2, k3 = jax.random.split(key, 3)
    x = jax.random.normal(k1, (N, n_feats, H, W), dtype=jnp.float32)
    conv_w = 0.1 * jax.random.normal(
        k2, (n_feats * scale * scale, n_feats, 3, 3), dtype=jnp.float32)
    conv_b = 0.1 * jax.random.normal(
        k3, (n_feats * scale * scale,), dtype=jnp.float32)
    bn_gamma = jnp.ones((n_feats,), dtype=jnp.float32)   # PyTorch BN affine init
    bn_beta = jnp.zeros((n_feats,), dtype=jnp.float32)

    ref = up_reference(x, conv_w, conv_b, bn_gamma, bn_beta, scale=scale)

    # f32 compute path: must match the reference tightly.
    out = up_forward(x, conv_w, conv_b, bn_gamma, bn_beta, scale=scale)
    out = jax.block_until_ready(out)
    assert out.shape == (N, n_feats, H * scale, W * scale), out.shape
    assert jnp.allclose(out, ref, atol=1e-4, rtol=1e-4), (
        "f32 mismatch vs reference, max abs err = "
        f"{float(jnp.max(jnp.abs(out - ref)))}")

    # bf16 compute path (halves HBM traffic for the MXU operands, the conv
    # intermediate and the BN-apply output); f32 accumulation keeps it close.
    out_bf16 = up_forward(x, conv_w, conv_b, bn_gamma, bn_beta, scale=scale,
                          compute_dtype=jnp.bfloat16)
    out_bf16 = jax.block_until_ready(out_bf16)
    assert jnp.allclose(out_bf16, ref, atol=5e-2, rtol=5e-2), (
        "bf16 mismatch vs reference, max abs err = "
        f"{float(jnp.max(jnp.abs(out_bf16 - ref)))}")

    print("KERNEL_OK")
</pallas_src>

<mosaic_0001>
module attributes {stable_mosaic.version = 11 : i64} {
  func.func @_bn_relu_kernel(%arg0: i32, %arg1: memref<256x16xf32, #tpu.memory_space<vmem>>, %arg2: memref<1x16xf32, #tpu.memory_space<vmem>>, %arg3: memref<1x16xf32, #tpu.memory_space<vmem>>, %arg4: memref<256x16xf32, #tpu.memory_space<vmem>>) attributes {dimension_semantics = [#tpu.dimension_semantics<parallel>], iteration_bounds = array<i64: 2>, scalar_prefetch = 0 : i64, scratch_operands = 0 : i64, tpu.core_type = #tpu.core_type<tc>, window_params = [{transform_indices = @transform_0, window_bounds = array<i64: 256, 16>}, {pipeline_mode = #tpu.pipeline_mode<synchronous>, transform_indices = @transform_1, window_bounds = array<i64: 1, 16>}, {pipeline_mode = #tpu.pipeline_mode<synchronous>, transform_indices = @transform_2, window_bounds = array<i64: 1, 16>}, {transform_indices = @transform_3, window_bounds = array<i64: 256, 16>}]} {
    %c0 = arith.constant 0 : index
    %c0_0 = arith.constant 0 : index
    %0 = vector.load %arg1[%c0, %c0_0] : memref<256x16xf32, #tpu.memory_space<vmem>>, vector<256x16xf32>
    %c0_1 = arith.constant 0 : index
    %c0_2 = arith.constant 0 : index
    %1 = vector.load %arg2[%c0_1, %c0_2] : memref<1x16xf32, #tpu.memory_space<vmem>>, vector<1x16xf32>
    %2 = vector.broadcast %1 : vector<1x16xf32> to vector<256x16xf32>
    %3 = arith.mulf %0, %2 : vector<256x16xf32>
    %c0_3 = arith.constant 0 : index
    %c0_4 = arith.constant 0 : index
    %4 = vector.load %arg3[%c0_3, %c0_4] : memref<1x16xf32, #tpu.memory_space<vmem>>, vector<1x16xf32>
    %5 = vector.broadcast %4 : vector<1x16xf32> to vector<256x16xf32>
    %6 = arith.addf %3, %5 : vector<256x16xf32>
    %cst = arith.constant 0.000000e+00 : f32
    %7 = vector.broadcast %cst : f32 to vector<256x16xf32>
    %8 = arith.maximumf %6, %7 : vector<256x16xf32>
    %c0_5 = arith.constant 0 : index
    %c0_6 = arith.constant 0 : index
    %9 = vector.load %arg4[%c0_5, %c0_6] : memref<256x16xf32, #tpu.memory_space<vmem>>, vector<256x16xf32>
    tpu.vector_store %arg4[%c0_5, %c0_6], %8 {strides = array<i32>} : memref<256x16xf32, #tpu.memory_space<vmem>>, vector<256x16xf32>,
    return
  }
  func.func @transform_0(%arg0: i32) -> (i32, i32) {
    %c0_i32 = arith.constant 0 : i32
    %c0_i32_0 = arith.constant 0 : i32
    return %arg0, %c0_i32 : i32, i32
  }
  func.func @transform_1(%arg0: i32) -> (i32, i32) {
    %c0_i32 = arith.constant 0 : i32
    %c0_i32_0 = arith.constant 0 : i32
    %c0_i32_1 = arith.constant 0 : i32
    return %c0_i32, %c0_i32_0 : i32, i32
  }
  func.func @transform_2(%arg0: i32) -> (i32, i32) {
    %c0_i32 = arith.constant 0 : i32
    %c0_i32_0 = arith.constant 0 : i32
    %c0_i32_1 = arith.constant 0 : i32
    return %c0_i32, %c0_i32_0 : i32, i32
  }
  func.func @transform_3(%arg0: i32) -> (i32, i32) {
    %c0_i32 = arith.constant 0 : i32
    %c0_i32_0 = arith.constant 0 : i32
    return %arg0, %c0_i32 : i32, i32
  }
}

module attributes {stable_mosaic.version = 11 : i64} {
  func.func @_conv_stats_kernel(%arg0: i32, %arg1: memref<1x10x18x4xf32, #tpu.memory_space<vmem>>, %arg2: memref<36x16xf32, #tpu.memory_space<vmem>>, %arg3: memref<1x128x16xf32, #tpu.memory_space<vmem>>, %arg4: memref<1x1x16xf32, #tpu.memory_space<vmem>>, %arg5: memref<1x1x16xf32, #tpu.memory_space<vmem>>, %arg6: memref<128x36xf32, #tpu.memory_space<vmem>>) attributes {dimension_semantics = [#tpu.dimension_semantics<parallel>], iteration_bounds = array<i64: 4>, scalar_prefetch = 0 : i64, scratch_operands = 1 : i64, tpu.core_type = #tpu.core_type<tc>, window_params = [{transform_indices = @transform_0, window_bounds = array<i64: 1, 10, 18, 4>}, {pipeline_mode = #tpu.pipeline_mode<synchronous>, transform_indices = @transform_1, window_bounds = array<i64: 36, 16>}, {transform_indices = @transform_2, window_bounds = array<i64: 1, 128, 16>}, {transform_indices = @transform_3, window_bounds = array<i64: 1, 1, 16>}, {transform_indices = @transform_4, window_bounds = array<i64: 1, 1, 16>}]} {
    %c0 = arith.constant 0 : index
    %c0_0 = arith.constant 0 : index
    %c0_1 = arith.constant 0 : index
    %c0_2 = arith.constant 0 : index
    %0 = vector.load %arg1[%c0, %c0_0, %c0_1, %c0_2] : memref<1x10x18x4xf32, #tpu.memory_space<vmem>>, vector<1x8x16x4xf32>
    %1 = vector.shape_cast %0 : vector<1x8x16x4xf32> to vector<8x16x4xf32>
    %2 = vector.shape_cast %1 : vector<8x16x4xf32> to vector<128x4xf32>
    %c0_3 = arith.constant 0 : index
    %c0_4 = arith.constant 0 : index
    %3 = vector.load %arg6[%c0_3, %c0_4] : memref<128x36xf32, #tpu.memory_space<vmem>>, vector<128x4xf32>
    tpu.vector_store %arg6[%c0_3, %c0_4], %2 {strides = array<i32>} : memref<128x36xf32, #tpu.memory_space<vmem>>, vector<128x4xf32>,
    %c0_5 = arith.constant 0 : index
    %c0_6 = arith.constant 0 : index
    %c1 = arith.constant 1 : index
    %c0_7 = arith.constant 0 : index
    %4 = vector.load %arg1[%c0_5, %c0_6, %c1, %c0_7] : memref<1x10x18x4xf32, #tpu.memory_space<vmem>>, vector<1x8x16x4xf32>
    %5 = vector.shape_cast %4 : vector<1x8x16x4xf32> to vector<8x16x4xf32>
    %6 = vector.shape_cast %5 : vector<8x16x4xf32> to vector<128x4xf32>
    %c0_8 = arith.constant 0 : index
    %c4 = arith.constant 4 : index
    %7 = vector.load %arg6[%c0_8, %c4] : memref<128x36xf32, #tpu.memory_space<vmem>>, vector<128x4xf32>
    tpu.vector_store %arg6[%c0_8, %c4], %6 {strides = array<i32>} : memref<128x36xf32, #tpu.memory_space<vmem>>, vector<128x4xf32>,
    %c0_9 = arith.constant 0 : index
    %c0_10 = arith.constant 0 : index
    %c2 = arith.constant 2 : index
    %c0_11 = arith.constant 0 : index
    %8 = vector.load %arg1[%c0_9, %c0_10, %c2, %c0_11] : memref<1x10x18x4xf32, #tpu.memory_space<vmem>>, vector<1x8x16x4xf32>
    %9 = vector.shape_cast %8 : vector<1x8x16x4xf32> to vector<8x16x4xf32>
    %10 = vector.shape_cast %9 : vector<8x16x4xf32> to vector<128x4xf32>
    %c0_12 = arith.constant 0 : index
    %c8 = arith.constant 8 : index
    %11 = vector.load %arg6[%c0_12, %c8] : memref<128x36xf32, #tpu.memory_space<vmem>>, vector<128x4xf32>
    tpu.vector_store %arg6[%c0_12, %c8], %10 {strides = array<i32>} : memref<128x36xf32, #tpu.memory_space<vmem>>, vector<128x4xf32>,
    %c0_13 = arith.constant 0 : index
    %c1_14 = arith.constant 1 : index
    %c0_15 = arith.constant 0 : index
    %c0_16 = arith.constant 0 : index
    %12 = vector.load %arg1[%c0_13, %c1_14, %c0_15, %c0_16] : memref<1x10x18x4xf32, #tpu.memory_space<vmem>>, vector<1x8x16x4xf32>
    %13 = vector.shape_cast %12 : vector<1x8x16x4xf32> to vector<8x16x4xf32>
    %14 = vector.shape_cast %13 : vector<8x16x4xf32> to vector<128x4xf32>
    %c0_17 = arith.constant 0 : index
    %c12 = arith.constant 12 : index
    %15 = vector.load %arg6[%c0_17, %c12] : memref<128x36xf32, #tpu.memory_space<vmem>>, vector<128x4xf32>
    tpu.vector_store %arg6[%c0_17, %c12], %14 {strides = array<i32>} : memref<128x36xf32, #tpu.memory_space<vmem>>, vector<128x4xf32>,
    %c0_18 = arith.constant 0 : index
    %c1_19 = arith.constant 1 : index
    %c1_20 = arith.constant 1 : index
    %c0_21 = arith.constant 0 : index
    %16 = vector.load %arg1[%c0_18, %c1_19, %c1_20, %c0_21] : memref<1x10x18x4xf32, #tpu.memory_space<vmem>>, vector<1x8x16x4xf32>
    %17 = vector.shape_cast %16 : vector<1x8x16x4xf32> to vector<8x16x4xf32>
    %18 = vector.shape_cast %17 : vector<8x16x4xf32> to vector<128x4xf32>
    %c0_22 = arith.constant 0 : index
    %c16 = arith.constant 16 : index
    %19 = vector.load %arg6[%c0_22, %c16] : memref<128x36xf32, #tpu.memory_space<vmem>>, vector<128x4xf32>
    tpu.vector_store %arg6[%c0_22, %c16], %18 {strides = array<i32>} : memref<128x36xf32, #tpu.memory_space<vmem>>, vector<128x4xf32>,
    %c0_23 = arith.constant 0 : index
    %c1_24 = arith.constant 1 : index
    %c2_25 = arith.constant 2 : index
    %c0_26 = arith.constant 0 : index
    %20 = vector.load %arg1[%c0_23, %c1_24, %c2_25, %c0_26] : memref<1x10x18x4xf32, #tpu.memory_space<vmem>>, vector<1x8x16x4xf32>
    %21 = vector.shape_cast %20 : vector<1x8x16x4xf32> to vector<8x16x4xf32>
    %22 = vector.shape_cast %21 : vector<8x16x4xf32> to vector<128x4xf32>
    %c0_27 = arith.constant 0 : index
    %c20 = arith.constant 20 : index
    %23 = vector.load %arg6[%c0_27, %c20] : memref<128x36xf32, #tpu.memory_space<vmem>>, vector<128x4xf32>
    tpu.vector_store %arg6[%c0_27, %c20], %22 {strides = array<i32>} : memref<128x36xf32, #tpu.memory_space<vmem>>, vector<128x4xf32>,
    %c0_28 = arith.constant 0 : index
    %c2_29 = arith.constant 2 : index
    %c0_30 = arith.constant 0 : index
    %c0_31 = arith.constant 0 : index
    %24 = vector.load %arg1[%c0_28, %c2_29, %c0_30, %c0_31] : memref<1x10x18x4xf32, #tpu.memory_space<vmem>>, vector<1x8x16x4xf32>
    %25 = vector.shape_cast %24 : vector<1x8x16x4xf32> to vector<8x16x4xf32>
    %26 = vector.shape_cast %25 : vector<8x16x4xf32> to vector<128x4xf32>
    %c0_32 = arith.constant 0 : index
    %c24 = arith.constant 24 : index
    %27 = vector.load %arg6[%c0_32, %c24] : memref<128x36xf32, #tpu.memory_space<vmem>>, vector<128x4xf32>
    tpu.vector_store %arg6[%c0_32, %c24], %26 {strides = array<i32>} : memref<128x36xf32, #tpu.memory_space<vmem>>, vector<128x4xf32>,
    %c0_33 = arith.constant 0 : index
    %c2_34 = arith.constant 2 : index
    %c1_35 = arith.constant 1 : index
    %c0_36 = arith.constant 0 : index
    %28 = vector.load %arg1[%c0_33, %c2_34, %c1_35, %c0_36] : memref<1x10x18x4xf32, #tpu.memory_space<vmem>>, vector<1x8x16x4xf32>
    %29 = vector.shape_cast %28 : vector<1x8x16x4xf32> to vector<8x16x4xf32>
    %30 = vector.shape_cast %29 : vector<8x16x4xf32> to vector<128x4xf32>
    %c0_37 = arith.constant 0 : index
    %c28 = arith.constant 28 : index
    %31 = vector.load %arg6[%c0_37, %c28] : memref<128x36xf32, #tpu.memory_space<vmem>>, vector<128x4xf32>
    tpu.vector_store %arg6[%c0_37, %c28], %30 {strides = array<i32>} : memref<128x36xf32, #tpu.memory_space<vmem>>, vector<128x4xf32>,
    %c0_38 = arith.constant 0 : index
    %c2_39 = arith.constant 2 : index
    %c2_40 = arith.constant 2 : index
    %c0_41 = arith.constant 0 : index
    %32 = vector.load %arg1[%c0_38, %c2_39, %c2_40, %c0_41] : memref<1x10x18x4xf32, #tpu.memory_space<vmem>>, vector<1x8x16x4xf32>
    %33 = vector.shape_cast %32 : vector<1x8x16x4xf32> to vector<8x16x4xf32>
    %34 = vector.shape_cast %33 : vector<8x16x4xf32> to vector<128x4xf32>
    %c0_42 = arith.constant 0 : index
    %c32 = arith.constant 32 : index
    %35 = vector.load %arg6[%c0_42, %c32] : memref<128x36xf32, #tpu.memory_space<vmem>>, vector<128x4xf32>
    tpu.vector_store %arg6[%c0_42, %c32], %34 {strides = array<i32>} : memref<128x36xf32, #tpu.memory_space<vmem>>, vector<128x4xf32>,
    %c0_43 = arith.constant 0 : index
    %c0_44 = arith.constant 0 : index
    %36 = vector.load %arg6[%c0_43, %c0_44] : memref<128x36xf32, #tpu.memory_space<vmem>>, vector<128x36xf32>
    %c0_45 = arith.constant 0 : index
    %c0_46 = arith.constant 0 : index
    %37 = vector.load %arg2[%c0_45, %c0_46] : memref<36x16xf32, #tpu.memory_space<vmem>>, vector<36x16xf32>
    %cst = arith.constant dense<0.000000e+00> : vector<128x16xf32>
    %38 = tpu.matmul %36, %37, %cst {dimension_numbers = #tpu.dot_dimension_numbers<[1], [0], [0], [1], [0, 0, 1, 1], [], []>} : vector<128x36xf32>, vector<36x16xf32>, vector<128x16xf32> -> vector<128x16xf32>
    %c0_47 = arith.constant 0 : index
    %c0_48 = arith.constant 0 : index
    %c0_49 = arith.constant 0 : index
    %39 = vector.load %arg3[%c0_47, %c0_48, %c0_49] : memref<1x128x16xf32, #tpu.memory_space<vmem>>, vector<1x128x16xf32>
    %40 = vector.shape_cast %39 : vector<1x128x16xf32> to vector<128x16xf32>
    %41 = vector.shape_cast %38 : vector<128x16xf32> to vector<1x128x16xf32>
    tpu.vector_store %arg3[%c0_47, %c0_48, %c0_49], %41 {strides = array<i32>} : memref<1x128x16xf32, #tpu.memory_space<vmem>>, vector<1x128x16xf32>,
    %cst_50 = arith.constant dense<0.000000e+00> : vector<16xf32>
    %42 = vector.multi_reduction <add>, %38, %cst_50 [0] : vector<128x16xf32> to vector<16xf32>
    %43 = vector.shape_cast %42 : vector<16xf32> to vector<1x16xf32>
    %c0_51 = arith.constant 0 : index
    %c0_52 = arith.constant 0 : index
    %c0_53 = arith.constant 0 : index
    %44 = vector.load %arg4[%c0_51, %c0_52, %c0_53] : memref<1x1x16xf32, #tpu.memory_space<vmem>>, vector<1x1x16xf32>
    %45 = vector.shape_cast %44 : vector<1x1x16xf32> to vector<1x16xf32>
    %46 = vector.shape_cast %43 : vector<1x16xf32> to vector<1x1x16xf32>
    tpu.vector_store %arg4[%c0_51, %c0_52, %c0_53], %46 {strides = array<i32>} : memref<1x1x16xf32, #tpu.memory_space<vmem>>, vector<1x1x16xf32>,
    %47 = arith.mulf %38, %38 : vector<128x16xf32>
    %cst_54 = arith.constant dense<0.000000e+00> : vector<16xf32>
    %48 = vector.multi_reduction <add>, %47, %cst_54 [0] : vector<128x16xf32> to vector<16xf32>
    %49 = vector.shape_cast %48 : vector<16xf32> to vector<1x16xf32>
    %c0_55 = arith.constant 0 : index
    %c0_56 = arith.constant 0 : index
    %c0_57 = arith.constant 0 : index
    %50 = vector.load %arg5[%c0_55, %c0_56, %c0_57] : memref<1x1x16xf32, #tpu.memory_space<vmem>>, vector<1x1x16xf32>
    %51 = vector.shape_cast %50 : vector<1x1x16xf32> to vector<1x16xf32>
    %52 = vector.shape_cast %49 : vector<1x16xf32> to vector<1x1x16xf32>
    tpu.vector_store %arg5[%c0_55, %c0_56, %c0_57], %52 {strides = array<i32>} : memref<1x1x16xf32, #tpu.memory_space<vmem>>, vector<1x1x16xf32>,
    return
  }
  func.func @transform_0(%arg0: i32) -> (i32, i32, i32, i32) {
    %c0_i32 = arith.constant 0 : i32
    %c0_i32_0 = arith.constant 0 : i32
    %c0_i32_1 = arith.constant 0 : i32
    %c0_i32_2 = arith.constant 0 : i32
    return %arg0, %c0_i32, %c0_i32_0, %c0_i32_1 : i32, i32, i32, i32
  }
  func.func @transform_1(%arg0: i32) -> (i32, i32) {
    %c0_i32 = arith.constant 0 : i32
    %c0_i32_0 = arith.constant 0 : i32
    %c0_i32_1 = arith.constant 0 : i32
    return %c0_i32, %c0_i32_0 : i32, i32
  }
  func.func @transform_2(%arg0: i32) -> (i32, i32, i32) {
    %c0_i32 = arith.constant 0 : i32
    %c0_i32_0 = arith.constant 0 : i32
    %c0_i32_1 = arith.constant 0 : i32
    return %arg0, %c0_i32, %c0_i32_0 : i32, i32, i32
  }
  func.func @transform_3(%arg0: i32) -> (i32, i32, i32) {
    %c0_i32 = arith.constant 0 : i32
    %c0_i32_0 = arith.constant 0 : i32
    %c0_i32_1 = arith.constant 0 : i32
    return %arg0, %c0_i32, %c0_i32_0 : i32, i32, i32
  }
  func.func @transform_4(%arg0: i32) -> (i32, i32, i32) {
    %c0_i32 = arith.constant 0 : i32
    %c0_i32_0 = arith.constant 0 : i32
    %c0_i32_1 = arith.constant 0 : i32
    return %arg0, %c0_i32, %c0_i32_0 : i32, i32, i32
  }
}

</mosaic_0001>

<bundles_post_ra>
// kernel: up_forward.3
= control target key start
LH: loop header
LB: loop body
LE: loop exit
PB: predicated region body
PF: predicated region fallthrough
CT: control target
= control target key end

     0   :  { %s454_s12 = smov 0   ;;  %s645_s0 = inlined_call_operand.vmem [shape: f32[512,16], index: 0, kind: input, shape index: {}]   ;;  %s646_s1 = inlined_call_operand.vmem [shape: f32[1,16], index: 1, kind: input, shape index: {}]   ;;  %s647_s2 = inlined_call_operand.vmem [shape: f32[1,16], index: 2, kind: input, shape index: {}]   ;;  %s648_s3 = inlined_call_operand.vmem [shape: f32[512,16], index: 3, kind: output, shape index: {}]  }
   0x1 LB: > { %s405_s13 = sadd.s32 4294967295, %s432_s12   ;;  %p409_p0 = scmp.ge.s32.totalorder %s432_s12, 1  ;;  %s432_s12 = sphi %s454_s12, %s13_s12  }
   0x2   : > { %p138_p1 = scmp.lt.s32.totalorder %s432_s12, 3 }
   0x4   : > { %p139_p2 = pnand %p409_p0, %p138_p1 }
   0x5   : > { %s410_s14 = sshll.u32 (!%p139_p2), %s405_s13, 5 }
   0x6   : > { %142 = sbr.rel (%p139_p2) target bundleno = 44 (0x2c), region = 32  ;;  %p163_p3 = scmp.lt.s32.totalorder (!%p139_p2), %s410_s14, 63 }
   0xb   : > { %s650_s14 = smov (!%p163_p3, %s410_s14), 63  ;;  %v465_v0 = vld [vmem:[%s646_s1] ss:$0 sm:$0xff]  ;;  %vm316_vm0 = vcmask 130048  }
   0xc   : > { %s411_s15 = sshll.u32 %s650_s14, 3  ;;  %v475_v1 = vld [vmem:[%s647_s2] ss:$0 sm:$0xff] }
   0xd   : > { %s470_s20 = scalar_lea.vmem %s645_s0, %s411_s15  ;;  %s498_s25 = scalar_lea.vmem %s648_s3, %s411_s15 }
   0xe   : > { %v174_v2 = vld [vmem:[%s470_s20] sm:$0xff]  ;;  %v175_v3 = vld [vmem:[%s470_s20 + $0x8] sm:$0xff]  ;;  %v176_v4 = vld [vmem:[%s470_s20 + $0x10] sm:$0xff] }
   0xf   : > { %v213_v5 = vmul.f32 %v465_v0, %v174_v2  ;;  %v214_v6 = vmul.f32 %v465_v0, %v175_v3  ;;  %v215_v7 = vmul.f32 %v465_v0, %v176_v4  ;;  %v177_v8 = vld [vmem:[%s470_s20 + $0x18] sm:$0xff]  ;;  %v178_v9 = vld [vmem:[%s470_s20 + $0x20] sm:$0xff]  ;;  %v179_v10 = vld [vmem:[%s470_s20 + $0x28] sm:$0xff] }
  0x10   : > { %v216_v11 = vmul.f32 %v465_v0, %v177_v8  ;;  %v217_v12 = vmul.f32 %v465_v0, %v178_v9  ;;  %v218_v13 = vmul.f32 %v465_v0, %v179_v10  ;;  %v180_v14 = vld [vmem:[%s470_s20 + $0x30] sm:$0xff]  ;;  %v181_v15 = vld [vmem:[%s470_s20 + $0x38] sm:$0xff]  ;;  %v182_v24 = vld [vmem:[%s470_s20 + $0x40] sm:$0xff] }
  0x11   : > { %v252_v16 = vadd.f32 %v475_v1, %v213_v5  ;;  %v253_v17 = vadd.f32 %v475_v1, %v214_v6  ;;  %v254_v18 = vadd.f32 %v475_v1, %v215_v7  ;;  %v219_v19 = vmul.f32 %v465_v0, %v180_v14  ;;  %v183_v25 = vld [vmem:[%s470_s20 + $0x48] sm:$0xff]  ;;  %v184_v26 = vld [vmem:[%s470_s20 + $0x50] sm:$0xff]  ;;  %v185_v31 = vld [vmem:[%s470_s20 + $0x58] sm:$0xff] }
  0x12   : > { %v255_v20 = vadd.f32 %v475_v1, %v216_v11  ;;  %v256_v21 = vadd.f32 %v475_v1, %v217_v12  ;;  %v257_v22 = vadd.f32 %v475_v1, %v218_v13  ;;  %v220_v23 = vmul.f32 %v465_v0, %v181_v15  ;;  %v186_v32 = vld [vmem:[%s470_s20 + $0x60] sm:$0xff]  ;;  %v187_v33 = vld [vmem:[%s470_s20 + $0x68] sm:$0xff]  ;;  %v188_v38 = vld [vmem:[%s470_s20 + $0x70] sm:$0xff] }
  0x13   : > { %v284_v27 = vmax.f32 %v252_v16, 0.0  ;;  %v285_v28 = vmax.f32 %v253_v17, 0.0  ;;  %v286_v29 = vmax.f32 %v254_v18, 0.0  ;;  %v258_v30 = vadd.f32 %v475_v1, %v219_v19  ;;  %v189_v43 = vld [vmem:[%s470_s20 + $0x78] sm:$0xff]  ;;  %v190_v56 = vld [vmem:[%s470_s20 + $0x80] sm:$0xff]  ;;  %v191_v57 = vld [vmem:[%s470_s20 + $0x88] sm:$0xff] }
  0x14   : > { %v287_v34 = vmax.f32 %v255_v20, 0.0  ;;  %v288_v35 = vmax.f32 %v256_v21, 0.0  ;;  %v289_v36 = vmax.f32 %v257_v22, 0.0  ;;  %v259_v37 = vadd.f32 %v475_v1, %v220_v23  ;;  %v192_v58 = vld [vmem:[%s470_s20 + $0x90] sm:$0xff]  ;;  %v193_v63 = vld [vmem:[%s470_s20 + $0x98] sm:$0xff]  ;;  %v194_v2 = vld [vmem:[%s470_s20 + $0xa0] sm:$0xff] }
  0x15   : > { %317 = vst.msk [vmem:[%s498_s25] sm:$0xff] %vm316_vm0, %v284_v27  ;;  %318 = vst.msk [vmem:[%s498_s25 + $0x8] sm:$0xff] %vm316_vm0, %v285_v28  ;;  %v290_v39 = vmax.f32 %v258_v30, 0.0  ;;  %v221_v40 = vmul.f32 %v465_v0, %v182_v24  ;;  %v222_v41 = vmul.f32 %v465_v0, %v183_v25  ;;  %v223_v42 = vmul.f32 %v465_v0, %v184_v26  ;;  %v195_v3 = vld [vmem:[%s470_s20 + $0xa8] sm:$0xff]  ;;  %v196_v8 = vld [vmem:[%s470_s20 + $0xb0] sm:$0xff] }
  0x16   : > { %319 = vst.msk [vmem:[%s498_s25 + $0x10] sm:$0xff] %vm316_vm0, %v286_v29  ;;  %320 = vst.msk [vmem:[%s498_s25 + $0x18] sm:$0xff] %vm316_vm0, %v287_v34  ;;  %v291_v44 = vmax.f32 %v259_v37, 0.0  ;;  %v224_v45 = vmul.f32 %v465_v0, %v185_v31  ;;  %v225_v46 = vmul.f32 %v465_v0, %v186_v32  ;;  %v226_v47 = vmul.f32 %v465_v0, %v187_v33  ;;  %v197_v13 = vld [vmem:[%s470_s20 + $0xb8] sm:$0xff]  ;;  %v198_v26 = vld [vmem:[%s470_s20 + $0xc0] sm:$0xff] }
  0x17   : > { %321 = vst.msk [vmem:[%s498_s25 + $0x20] sm:$0xff] %vm316_vm0, %v288_v35  ;;  %322 = vst.msk [vmem:[%s498_s25 + $0x28] sm:$0xff] %vm316_vm0, %v289_v36  ;;  %v260_v48 = vadd.f32 %v475_v1, %v221_v40  ;;  %v261_v49 = vadd.f32 %v475_v1, %v222_v41  ;;  %v262_v50 = vadd.f32 %v475_v1, %v223_v42  ;;  %v199_v27 = vld [vmem:[%s470_s20 + $0xc8] sm:$0xff]  ;;  %v200_v28 = vld [vmem:[%s470_s20 + $0xd0] sm:$0xff] }
  0x18   : > { %323 = vst.msk [vmem:[%s498_s25 + $0x30] sm:$0xff] %vm316_vm0, %v290_v39  ;;  %v227_v51 = vmul.f32 %v465_v0, %v188_v38  ;;  %324 = vst.msk [vmem:[%s498_s25 + $0x38] sm:$0xff] %vm316_vm0, %v291_v44  ;;  %v263_v52 = vadd.f32 %v475_v1, %v224_v45  ;;  %v264_v53 = vadd.f32 %v475_v1, %v225_v46  ;;  %v201_v33 = vld [vmem:[%s470_s20 + $0xd8] sm:$0xff]  ;;  %v202_v34 = vld [vmem:[%s470_s20 + $0xe0] sm:$0xff] }
  0x19   : > { %v265_v54 = vadd.f32 %v475_v1, %v226_v47  ;;  %v228_v55 = vmul.f32 %v465_v0, %v189_v43  ;;  %v292_v59 = vmax.f32 %v260_v48, 0.0  ;;  %v293_v60 = vmax.f32 %v261_v49, 0.0  ;;  %v203_v35 = vld [vmem:[%s470_s20 + $0xe8] sm:$0xff]  ;;  %v204_v40 = vld [vmem:[%s470_s20 + $0xf0] sm:$0xff]  ;;  %v205_v45 = vld [vmem:[%s470_s20 + $0xf8] sm:$0xff] }
  0x1a   : > { %v294_v61 = vmax.f32 %v262_v50, 0.0  ;;  %v266_v62 = vadd.f32 %v475_v1, %v227_v51  ;;  %v295_v4 = vmax.f32 %v263_v52, 0.0  ;;  %v296_v5 = vmax.f32 %v264_v53, 0.0 }
  0x1b   : > { %v297_v6 = vmax.f32 %v265_v54, 0.0  ;;  %v267_v7 = vadd.f32 %v475_v1, %v228_v55  ;;  %325 = vst.msk [vmem:[%s498_s25 + $0x40] sm:$0xff] %vm316_vm0, %v292_v59  ;;  %326 = vst.msk [vmem:[%s498_s25 + $0x48] sm:$0xff] %vm316_vm0, %v293_v60  ;;  %v229_v10 = vmul.f32 %v465_v0, %v190_v56  ;;  %v230_v11 = vmul.f32 %v465_v0, %v191_v57 }
  0x1c   : > { %327 = vst.msk [vmem:[%s498_s25 + $0x50] sm:$0xff] %vm316_vm0, %v294_v61  ;;  %v298_v9 = vmax.f32 %v266_v62, 0.0  ;;  %v231_v12 = vmul.f32 %v465_v0, %v192_v58  ;;  %328 = vst.msk [vmem:[%s498_s25 + $0x58] sm:$0xff] %vm316_vm0, %v295_v4  ;;  %v232_v15 = vmul.f32 %v465_v0, %v193_v63  ;;  %v233_v16 = vmul.f32 %v465_v0, %v194_v2 }
  0x1d   : > { %329 = vst.msk [vmem:[%s498_s25 + $0x60] sm:$0xff] %vm316_vm0, %v296_v5  ;;  %330 = vst.msk [vmem:[%s498_s25 + $0x68] sm:$0xff] %vm316_vm0, %v297_v6  ;;  %v299_v14 = vmax.f32 %v267_v7, 0.0  ;;  %v234_v17 = vmul.f32 %v465_v0, %v195_v3  ;;  %v268_v18 = vadd.f32 %v475_v1, %v229_v10  ;;  %v269_v19 = vadd.f32 %v475_v1, %v230_v11 }
  0x1e   : > { %331 = vst.msk [vmem:[%s498_s25 + $0x70] sm:$0xff] %vm316_vm0, %v298_v9  ;;  %v270_v20 = vadd.f32 %v475_v1, %v231_v12  ;;  %v235_v21 = vmul.f32 %v465_v0, %v196_v8  ;;  %v271_v22 = vadd.f32 %v475_v1, %v232_v15  ;;  %v272_v23 = vadd.f32 %v475_v1, %v233_v16 }
  0x1f   : > { %332 = vst.msk [vmem:[%s498_s25 + $0x78] sm:$0xff] %vm316_vm0, %v299_v14  ;;  %v273_v24 = vadd.f32 %v475_v1, %v234_v17  ;;  %v236_v25 = vmul.f32 %v465_v0, %v197_v13  ;;  %v300_v29 = vmax.f32 %v268_v18, 0.0  ;;  %v301_v30 = vmax.f32 %v269_v19, 0.0 }
  0x20   : > { %v302_v31 = vmax.f32 %v270_v20, 0.0  ;;  %v274_v32 = vadd.f32 %v475_v1, %v235_v21  ;;  %v303_v36 = vmax.f32 %v271_v22, 0.0  ;;  %v304_v37 = vmax.f32 %v272_v23, 0.0 }
  0x21   : > { %v305_v38 = vmax.f32 %v273_v24, 0.0  ;;  %v275_v39 = vadd.f32 %v475_v1, %v236_v25  ;;  %333 = vst.msk [vmem:[%s498_s25 + $0x80] sm:$0xff] %vm316_vm0, %v300_v29  ;;  %334 = vst.msk [vmem:[%s498_s25 + $0x88] sm:$0xff] %vm316_vm0, %v301_v30  ;;  %v237_v42 = vmul.f32 %v465_v0, %v198_v26  ;;  %v238_v43 = vmul.f32 %v465_v0, %v199_v27 }
  0x22   : > { %335 = vst.msk [vmem:[%s498_s25 + $0x90] sm:$0xff] %vm316_vm0, %v302_v31  ;;  %v306_v41 = vmax.f32 %v274_v32, 0.0  ;;  %v239_v44 = vmul.f32 %v465_v0, %v200_v28  ;;  %336 = vst.msk [vmem:[%s498_s25 + $0x98] sm:$0xff] %vm316_vm0, %v303_v36  ;;  %v240_v47 = vmul.f32 %v465_v0, %v201_v33  ;;  %v241_v48 = vmul.f32 %v465_v0, %v202_v34 }
  0x23   : > { %337 = vst.msk [vmem:[%s498_s25 + $0xa0] sm:$0xff] %vm316_vm0, %v304_v37  ;;  %338 = vst.msk [vmem:[%s498_s25 + $0xa8] sm:$0xff] %vm316_vm0, %v305_v38  ;;  %v307_v46 = vmax.f32 %v275_v39, 0.0  ;;  %v242_v49 = vmul.f32 %v465_v0, %v203_v35  ;;  %v276_v50 = vadd.f32 %v475_v1, %v237_v42  ;;  %v277_v51 = vadd.f32 %v475_v1, %v238_v43 }
  0x24   : > { %339 = vst.msk [vmem:[%s498_s25 + $0xb0] sm:$0xff] %vm316_vm0, %v306_v41  ;;  %v278_v52 = vadd.f32 %v475_v1, %v239_v44  ;;  %v243_v53 = vmul.f32 %v465_v0, %v204_v40  ;;  %v279_v54 = vadd.f32 %v475_v1, %v240_v47  ;;  %v280_v55 = vadd.f32 %v475_v1, %v241_v48 }
  0x25   : > { %340 = vst.msk [vmem:[%s498_s25 + $0xb8] sm:$0xff] %vm316_vm0, %v307_v46  ;;  %v281_v56 = vadd.f32 %v475_v1, %v242_v49  ;;  %v244_v57 = vmul.f32 %v465_v0, %v205_v45  ;;  %v308_v58 = vmax.f32 %v276_v50, 0.0  ;;  %v309_v59 = vmax.f32 %v277_v51, 0.0 }
  0x26   : > { %v310_v60 = vmax.f32 %v278_v52, 0.0  ;;  %v282_v61 = vadd.f32 %v475_v1, %v243_v53  ;;  %v311_v62 = vmax.f32 %v279_v54, 0.0  ;;  %v312_v63 = vmax.f32 %v280_v55, 0.0 }
  0x27   : > { %v313_v2 = vmax.f32 %v281_v56, 0.0  ;;  %v283_v3 = vadd.f32 %v475_v1, %v244_v57  ;;  %341 = vst.msk [vmem:[%s498_s25 + $0xc0] sm:$0xff] %vm316_vm0, %v308_v58  ;;  %342 = vst.msk [vmem:[%s498_s25 + $0xc8] sm:$0xff] %vm316_vm0, %v309_v59 }
  0x28   : > { %343 = vst.msk [vmem:[%s498_s25 + $0xd0] sm:$0xff] %vm316_vm0, %v310_v60  ;;  %v314_v4 = vmax.f32 %v282_v61, 0.0  ;;  %344 = vst.msk [vmem:[%s498_s25 + $0xd8] sm:$0xff] %vm316_vm0, %v311_v62 }
  0x29   : > { %345 = vst.msk [vmem:[%s498_s25 + $0xe0] sm:$0xff] %vm316_vm0, %v312_v63  ;;  %346 = vst.msk [vmem:[%s498_s25 + $0xe8] sm:$0xff] %vm316_vm0, %v313_v2  ;;  %v315_v0 = vmax.f32 %v283_v3, 0.0 }
  0x2a   : > { %347 = vst.msk [vmem:[%s498_s25 + $0xf0] sm:$0xff] %vm316_vm0, %v314_v4 }
  0x2b   : > { %348 = vst.msk [vmem:[%s498_s25 + $0xf8] sm:$0xff] %vm316_vm0, %v315_v0 }
  0x2c PF: > { %s13_s12 = sadd.s32 1, %s432_s12  }
  0x2d   : > { %p10_p4 = scmp.ge.s32.totalorder %s13_s12, 4  }
  0x2f   :  { %12 = sbr.rel (!%p10_p4) target bundleno = 1 (0x1), region = 62 }

// kernel: up_forward.2
= control target key start
LH: loop header
LB: loop body
LE: loop exit
PB: predicated region body
PF: predicated region fallthrough
CT: control target
= control target key end

     0   :  { %s1707_s15 = smov 0   ;;  %s2217_s0 = inlined_call_operand.vmem [shape: f32[4,10,18,4], index: 0, kind: input, shape index: {}]   ;;  %s2218_s1 = inlined_call_operand.vmem [shape: f32[36,16], index: 1, kind: input, shape index: {}]   ;;  %s2219_s2 = inlined_call_operand.vmem [shape: f32[4,128,16], index: 2, kind: output, shape index: {0}]   ;;  %s2220_s3 = inlined_call_operand.vmem [shape: f32[4,1,16], index: 3, kind: output, shape index: {1}]   ;;  %s2221_s4 = inlined_call_operand.vmem [shape: f32[4,1,16], index: 4, kind: output, shape index: {2}]  }
   0x1 LB: > { %s1460_s16 = sadd.s32 4294967295, %s1672_s15   ;;  %p1464_p0 = scmp.ge.s32.totalorder %s1672_s15, 1  ;;  %s1672_s15 = sphi %s1707_s15, %s15_s15  }
   0x2   : > { %p167_p1 = scmp.lt.s32.totalorder %s1672_s15, 5 }
   0x4   : > { %p168_p2 = pnand %p1464_p0, %p167_p1 }
   0x5   : > { %p199_p3 = scmp.lt.s32.totalorder (!%p168_p2), %s1460_s16, 3  ;;  %s1674_s21 = smov (!%p168_p2), 8  }
   0x6   : > { %171 = sbr.rel (%p168_p2) target bundleno = 608 (0x260), region = 28  ;;  %s1675_s22 = smov (!%p168_p2), 4  }
   0x7   : > { %s1676_s23 = smov (!%p168_p2), 12   ;;  %s1677_s24 = smov (!%p168_p2), 16  }
   0x8   : > { %s1678_s25 = smov (!%p168_p2), 20   ;;  %s1679_s26 = smov (!%p168_p2), 24  }
   0x9   : > { %s1680_s27 = smov (!%p168_p2), 28   ;;  %s1681_s10 = smov (!%p168_p2), 32  }
   0xb   : > { %s2223_s16 = smov (!%p199_p3, %s1460_s16), 3  ;;  %vm231_vm0 = vcmask 31744   ;;  %v1046_v23 = vld [vmem:[%s2218_s1 + $0x20] sm:$0xf]  ;;  %vm1096_vm1 = vcmask 1043456   ;;  %v1045_v24 = vld [vmem:[%s2218_s1 + $0x18] sm:$0xff] }
   0xc   : > { %s1649_s17 = smul.u32 240, %s2223_s16  ;;  %1605 = vmatprep.subr.msk.mxu0 %vm1096_vm1, %v1046_v23  ;;  %1639 = vmatprep.subr.msk.mxu1 %vm1096_vm1, %v1046_v23  ;;  %v1044_v25 = vld [vmem:[%s2218_s1 + $0x10] sm:$0xff]  ;;  %v1043_v28 = vld [vmem:[%s2218_s1 + $0x8] sm:$0xff]  ;;  %v1042_v29 = vld [vmem:[%s2218_s1] sm:$0xff]  ;;  %vm328_vm2 = vcmask 64544   ;;  %vm425_vm3 = vcmask 97344  }
   0xd   : > { %1606 = vmatpush3.msk.msra.mxu0 %vm1096_vm1, %v1046_v23  ;;  %1644 = vmatpush3.msk.msra.mxu1 %vm1096_vm1, %v1046_v23  ;;  %vm523_vm4 = vcmask 130144   ;;  %vm620_vm5 = vcmask 162944   ;;  %vm717_vm6 = vcmask 195744   ;;  %vm815_vm7 = vcmask 228544   ;;  %s1583_s13 = sshll.u32 %s2223_s16, 7 }
   0xe   : > { %s1721_s20 = scalar_lea.vmem %s2217_s0, %s1649_s17  ;;  %1607 = vmatprep.subr.mxu0 %v1045_v24  ;;  %1640 = vmatprep.subr.mxu1 %v1045_v24  ;;  %vm912_vm8 = vcmask 261344   ;;  %vm1009_vm9 = vcmask 294144   ;;  %vm1047_vm10 = vcmask 293888   ;;  %s2133_s18 = scalar_lea.vmem %s2219_s2, %s1583_s13  ;;  %vm1245_vm11 = vcmask 130048  }
   0xf   : > { %v345_v0 = vld [vmem:[%s1721_s20 + $0x2] sm:$0xff]  ;;  %v346_v3 = vld [vmem:[%s1721_s20 + $0xa] sm:$0xff]  ;;  %v1468_v5 = vld [vmem:[%s1721_s20 + $0x18] sm:$0xff]  ;;  %1608 = vmatpush3.msra.mxu0 %v1045_v24  ;;  %1645 = vmatpush3.msra.mxu1 %v1045_v24  ;;  %vm1299_vm12 = vcmask 122880  }
  0x10   : > { %v248_v1 = vld [vmem:[%s1721_s20 + $0x1] sm:$0xff]  ;;  %377 = vrot.lane.b32.xlu1 %v345_v0, %s1674_s21  ;;  %v249_v4 = vld [vmem:[%s1721_s20 + $0x9] sm:$0xff]  ;;  %234 = vst.msk [vmem:[#allocation2 + $0x10] sm:$0xff] %vm231_vm0, %v1468_v5  ;;  %v1517_v7 = vld [vmem:[%s1721_s20 + $0x38] sm:$0xff]  ;;  %1609 = vmatprep.subr.mxu0 %v1044_v25 }
  0x11   : > { %280 = vrot.lane.b32.xlu0 %v248_v1, %s1675_s22  ;;  %v1469_v2 = vld [vmem:[%s1721_s20 + $0x20] sm:$0xff]  ;;  %v1516_v6 = vld [vmem:[%s1721_s20 + $0x30] sm:$0xff]  ;;  %237 = vst.msk [vmem:[#allocation2 + $0x28] sm:$0xff] %vm231_vm0, %v1517_v7  ;;  %v1740_v8 = vld [vmem:[%s1721_s20 + $0x48] sm:$0xff]  ;;  %1641 = vmatprep.subr.mxu1 %v1044_v25 }
  0x12   : > { %235 = vst.msk [vmem:[#allocation2 + $0x18] sm:$0xff] %vm231_vm0, %v1469_v2  ;;  %236 = vst.msk [vmem:[#allocation2 + $0x20] sm:$0xff] %vm231_vm0, %v1516_v6  ;;  %v1743_v9 = vld [vmem:[%s1721_s20 + $0x50] sm:$0xff]  ;;  %v1750_v10 = vld [vmem:[%s1721_s20 + $0x60] sm:$0xff]  ;;  %1610 = vmatpush3.msra.mxu0 %v1044_v25  ;;  %1646 = vmatpush3.msra.mxu1 %v1044_v25 }
  0x13   : > { %238 = vst.msk [vmem:[#allocation2 + $0x30] sm:$0xff] %vm231_vm0, %v1740_v8  ;;  %239 = vst.msk [vmem:[#allocation2 + $0x38] sm:$0xff] %vm231_vm0, %v1743_v9  ;;  %v1753_v11 = vld [vmem:[%s1721_s20 + $0x68] sm:$0xff]  ;;  %v250_v12 = vld [vmem:[%s1721_s20 + $0x19] sm:$0xff]  ;;  %1611 = vmatprep.subr.mxu0 %v1043_v28  ;;  %1642 = vmatprep.subr.mxu1 %v1043_v28 }
  0x14   : > { %379 = vrot.lane.b32.xlu1 %v346_v3, %s1674_s21  ;;  %240 = vst.msk [vmem:[#allocation2 + $0x40] sm:$0xff] %vm231_vm0, %v1750_v10  ;;  %241 = vst.msk [vmem:[#allocation2 + $0x48] sm:$0xff] %vm231_vm0, %v1753_v11  ;;  %v215_v13 = vld [vmem:[%s1721_s20] sm:$0xff]  ;;  %v216_v14 = vld [vmem:[%s1721_s20 + $0x8] sm:$0xff]  ;;  %1612 = vmatpush3.msra.mxu0 %v1043_v28 }
  0x15   : > { %282 = vrot.lane.b32.xlu0 %v249_v4, %s1675_s22  ;;  %232 = vst.msk [vmem:[#allocation2] sm:$0xff] %vm231_vm0, %v215_v13  ;;  %233 = vst.msk [vmem:[#allocation2 + $0x8] sm:$0xff] %vm231_vm0, %v216_v14  ;;  %v1767_v15 = vld [vmem:[%s1721_s20 + $0x78] sm:$0xff]  ;;  %v1770_v16 = vld [vmem:[%s1721_s20 + $0x80] sm:$0xff]  ;;  %1647 = vmatpush3.msra.mxu1 %v1043_v28 }
  0x16   : > { %242 = vst.msk [vmem:[#allocation2 + $0x50] sm:$0xff] %vm231_vm0, %v1767_v15  ;;  %243 = vst.msk [vmem:[#allocation2 + $0x58] sm:$0xff] %vm231_vm0, %v1770_v16  ;;  %v1500_v17 = vld [vmem:[%s1721_s20 + $0x1a] sm:$0xff]  ;;  %v1501_v19 = vld [vmem:[%s1721_s20 + $0x22] sm:$0xff]  ;;  %1613 = vmatprep.subr.mxu0 %v1042_v29  ;;  %1643 = vmatprep.subr.mxu1 %v1042_v29 }
  0x17   : > { %v1485_v18 = vld [vmem:[%s1721_s20 + $0x21] sm:$0xff]  ;;  %v1786_v20 = vld [vmem:[%s1721_s20 + $0x90] sm:$0xff]  ;;  %v1796_v22 = vld [vmem:[%s1721_s20 + $0x98] sm:$0xff]  ;;  %1614 = vmatpush3.msra.mxu0 %v1042_v29  ;;  %1648 = vmatpush3.msra.mxu1 %v1042_v29 }
  0x18   : > { %477 = vrot.lane.b32.xlu1 %v1469_v2, %s1676_s23  ;;  %244 = vst.msk [vmem:[#allocation2 + $0x60] sm:$0xff] %vm231_vm0, %v1786_v20  ;;  %v1532_v21 = vld [vmem:[%s1721_s20 + $0x31] sm:$0xff]  ;;  %245 = vst.msk [vmem:[#allocation2 + $0x68] sm:$0xff] %vm231_vm0, %v1796_v22  ;;  %v1533_v27 = vld [vmem:[%s1721_s20 + $0x39] sm:$0xff] }
  0x19   : > { %475 = vrot.lane.b32.xlu0 %v1468_v5, %s1676_s23  ;;  %v1548_v26 = vld [vmem:[%s1721_s20 + $0x32] sm:$0xff]  ;;  %v1549_v30 = vld [vmem:[%s1721_s20 + $0x3a] sm:$0xff]  ;;  %v1831_v31 = vld [vmem:[%s1721_s20 + $0xa8] sm:$0xff] }
  0x1a   : > { %246 = vst.msk [vmem:[#allocation2 + $0x70] sm:$0xff] %vm231_vm0, %v1831_v31  ;;  %v1534_v32 = vld [vmem:[%s1721_s20 + $0x49] sm:$0xff]  ;;  %v1535_v35 = vld [vmem:[%s1721_s20 + $0x51] sm:$0xff]  ;;  %v1536_v37 = vld [vmem:[%s1721_s20 + $0x61] sm:$0xff] }
  0x1b   : > { %v1843_v33 = vld [vmem:[%s1721_s20 + $0xb0] sm:$0xff]  ;;  %v1552_v38 = vld [vmem:[%s1721_s20 + $0x62] sm:$0xff]  ;;  %v1538_v47 = vld [vmem:[%s1721_s20 + $0x79] sm:$0xff] }
  0x1c   : > { %284 = vrot.lane.b32.xlu1 %v250_v12, %s1675_s22  ;;  %247 = vst.msk [vmem:[#allocation2 + $0x78] sm:$0xff] %vm231_vm0, %v1843_v33  ;;  %v1550_v34 = vld [vmem:[%s1721_s20 + $0x4a] sm:$0xff]  ;;  %v1551_v36 = vld [vmem:[%s1721_s20 + $0x52] sm:$0xff]  ;;  %v1554_v52 = vld [vmem:[%s1721_s20 + $0x7a] sm:$0xff] }
  0x1d   : > { %572 = vrot.lane.b32.xlu0 %v250_v12, %s1677_s24  ;;  %v1537_v39 = vld [vmem:[%s1721_s20 + $0x69] sm:$0xff]  ;;  %v1539_v53 = vld [vmem:[%s1721_s20 + $0x81] sm:$0xff]  ;;  %v1540_v3 = vld [vmem:[%s1721_s20 + $0x91] sm:$0xff] }
  0x1e   : > { %v1553_v40 = vld [vmem:[%s1721_s20 + $0x6a] sm:$0xff]  ;;  %v1555_v58 = vld [vmem:[%s1721_s20 + $0x82] sm:$0xff] }
  0x1f   : > { %v1542_v25 = vld [vmem:[%s1721_s20 + $0xa9] sm:$0xff] }
  0x20   : > { %669 = vrot.lane.b32.xlu1 %v1500_v17, %s1678_s25 }
  0x21   : > { %574 = vrot.lane.b32.xlu0 %v1485_v18, %s1677_s24 }
  0x24   : > { %381 = vrot.lane.b32.xlu1 %v1500_v17, %s1674_s21 }
  0x25   : > { %286 = vrot.lane.b32.xlu0 %v1485_v18, %s1675_s22 }
  0x28   : > { %767 = vrot.lane.b32.xlu1 %v1516_v6, %s1679_s26 }
  0x29   : > { %671 = vrot.lane.b32.xlu0 %v1501_v19, %s1678_s25 }
  0x2c   : > { %479 = vrot.lane.b32.xlu1 %v1516_v6, %s1676_s23 }
  0x2d   : > { %383 = vrot.lane.b32.xlu0 %v1501_v19, %s1674_s21 }
  0x30   : > { %864 = vrot.lane.b32.xlu1 %v1532_v21, %s1680_s27 }
  0x31   : > { %769 = vrot.lane.b32.xlu0 %v1517_v7, %s1679_s26 }
  0x34   : > { %576 = vrot.lane.b32.xlu1 %v1532_v21, %s1677_s24 }
  0x35   : > { %481 = vrot.lane.b32.xlu0 %v1517_v7, %s1676_s23 }
  0x38   : > { %961 = vrot.lane.b32.xlu1 %v1548_v26, %s1681_s10 }
  0x39   : > { %866 = vrot.lane.b32.xlu0 %v1533_v27, %s1680_s27 }
  0x3c   : > { %578 = vrot.lane.b32.xlu1 %v1533_v27, %s1677_s24 }
  0x3d   : > { %288 = vrot.lane.b32.xlu0 %v1532_v21, %s1675_s22 }
  0x40   : > { %963 = vrot.lane.b32.xlu1 %v1549_v30, %s1681_s10 }
  0x41   : > { %673 = vrot.lane.b32.xlu0 %v1548_v26, %s1678_s25 }
  0x44   : > { %385 = vrot.lane.b32.xlu1 %v1548_v26, %s1674_s21 }
  0x45   : > { %290 = vrot.lane.b32.xlu0 %v1533_v27, %s1675_s22 }
  0x48   : > { %771 = vrot.lane.b32.xlu1 %v1740_v8, %s1679_s26 }
  0x49   : > { %675 = vrot.lane.b32.xlu0 %v1549_v30, %s1678_s25 }
  0x4c   : > { %483 = vrot.lane.b32.xlu1 %v1740_v8, %s1676_s23 }
  0x4d   : > { %387 = vrot.lane.b32.xlu0 %v1549_v30, %s1674_s21 }
  0x50   : > { %868 = vrot.lane.b32.xlu1 %v1534_v32, %s1680_s27 }
  0x51   : > { %773 = vrot.lane.b32.xlu0 %v1743_v9, %s1679_s26 }
  0x54   : > { %580 = vrot.lane.b32.xlu1 %v1534_v32, %s1677_s24 }
  0x55   : > { %485 = vrot.lane.b32.xlu0 %v1743_v9, %s1676_s23  ;;  %v1556_v9 = vld [vmem:[%s1721_s20 + $0x92] sm:$0xff] }
  0x58   : > { %965 = vrot.lane.b32.xlu1 %v1550_v34, %s1681_s10 }
  0x59   : > { %870 = vrot.lane.b32.xlu0 %v1535_v35, %s1680_s27 }
  0x5c   : > { %582 = vrot.lane.b32.xlu1 %v1535_v35, %s1677_s24 }
  0x5d   : > { %292 = vrot.lane.b32.xlu0 %v1534_v32, %s1675_s22  ;;  %v1543_v32 = vld [vmem:[%s1721_s20 + $0xb1] sm:$0xff] }
  0x60   : > { %967 = vrot.lane.b32.xlu1 %v1551_v36, %s1681_s10 }
  0x61   : > { %677 = vrot.lane.b32.xlu0 %v1550_v34, %s1678_s25 }
  0x64   : > { %389 = vrot.lane.b32.xlu1 %v1550_v34, %s1674_s21 }
  0x65   : > { %294 = vrot.lane.b32.xlu0 %v1535_v35, %s1675_s22 }
  0x68   : > { %775 = vrot.lane.b32.xlu1 %v1750_v10, %s1679_s26 }
  0x69   : > { %679 = vrot.lane.b32.xlu0 %v1551_v36, %s1678_s25 }
  0x6c   : > { %487 = vrot.lane.b32.xlu1 %v1750_v10, %s1676_s23  ;;  %v1541_v10 = vld [vmem:[%s1721_s20 + $0x99] sm:$0xff] }
  0x6d   : > { %391 = vrot.lane.b32.xlu0 %v1551_v36, %s1674_s21 }
  0x70   : > { %872 = vrot.lane.b32.xlu1 %v1536_v37, %s1680_s27 }
  0x71   : > { %777 = vrot.lane.b32.xlu0 %v1753_v11, %s1679_s26 }
  0x74   : > { %584 = vrot.lane.b32.xlu1 %v1536_v37, %s1677_s24 }
  0x75   : > { %489 = vrot.lane.b32.xlu0 %v1753_v11, %s1676_s23 }
  0x78   : > { %969 = vrot.lane.b32.xlu1 %v1552_v38, %s1681_s10 }
  0x79   : > { %874 = vrot.lane.b32.xlu0 %v1537_v39, %s1680_s27 }
  0x7c   : > { %586 = vrot.lane.b32.xlu1 %v1537_v39, %s1677_s24 }
  0x7d   : > { %296 = vrot.lane.b32.xlu0 %v1536_v37, %s1675_s22 }
  0x80   : > { %971 = vrot.lane.b32.xlu1 %v1553_v40, %s1681_s10 }
  0x81   : > { %681 = vrot.lane.b32.xlu0 %v1552_v38, %s1678_s25 }
  0x82   : > { %v378_v41 = vpop.permute.xlu1 %377 }
  0x83   : > { %v281_v42 = vpop.permute.xlu0 %280 }
  0x84   : > { %329 = vst.msk [vmem:[#allocation2] sm:$0xff] %vm328_vm2, %v281_v42  ;;  %393 = vrot.lane.b32.xlu1 %v1552_v38, %s1674_s21 }
  0x85   : > { %298 = vrot.lane.b32.xlu0 %v1537_v39, %s1675_s22  ;;  %426 = vst.msk [vmem:[#allocation2] sm:$0xff] %vm425_vm3, %v378_v41 }
  0x86   : > { %v380_v43 = vpop.permute.xlu1 %379 }
  0x87   : > { %v283_v44 = vpop.permute.xlu0 %282 }
  0x88   : > { %330 = vst.msk [vmem:[#allocation2 + $0x8] sm:$0xff] %vm328_vm2, %v283_v44  ;;  %779 = vrot.lane.b32.xlu1 %v1767_v15, %s1679_s26 }
  0x89   : > { %683 = vrot.lane.b32.xlu0 %v1553_v40, %s1678_s25  ;;  %427 = vst.msk [vmem:[#allocation2 + $0x8] sm:$0xff] %vm425_vm3, %v380_v43  ;;  %v1528_v43 = vld [vmem:[%s1721_s20 + $0xc0] sm:$0xff] }
  0x8a   : > { %v478_v45 = vpop.permute.xlu1 %477 }
  0x8b   : > { %v476_v46 = vpop.permute.xlu0 %475  ;;  %525 = vst.msk [vmem:[#allocation2 + $0x8] sm:$0xff] %vm523_vm4, %v478_v45 }
  0x8c   : > { %524 = vst.msk [vmem:[#allocation2] sm:$0xff] %vm523_vm4, %v476_v46  ;;  %491 = vrot.lane.b32.xlu1 %v1767_v15, %s1676_s23 }
  0x8d   : > { %395 = vrot.lane.b32.xlu0 %v1553_v40, %s1674_s21 }
  0x8e   : > { %v285_v48 = vpop.permute.xlu1 %284 }
  0x8f   : > { %v573_v49 = vpop.permute.xlu0 %572  ;;  %331 = vst.msk [vmem:[#allocation2 + $0x10] sm:$0xff] %vm328_vm2, %v285_v48  ;;  %v1529_v48 = vld [vmem:[%s1721_s20 + $0xc8] sm:$0xff] }
  0x90   : > { %621 = vst.msk [vmem:[#allocation2] sm:$0xff] %vm620_vm5, %v573_v49  ;;  %876 = vrot.lane.b32.xlu1 %v1538_v47, %s1680_s27  ;;  %v1544_v49 = vld [vmem:[%s1721_s20 + $0xc1] sm:$0xff] }
  0x91   : > { %781 = vrot.lane.b32.xlu0 %v1770_v16, %s1679_s26 }
  0x92   : > { %v670_v50 = vpop.permute.xlu1 %669 }
  0x93   : > { %v575_v51 = vpop.permute.xlu0 %574  ;;  %718 = vst.msk [vmem:[#allocation2] sm:$0xff] %vm717_vm6, %v670_v50 }
  0x94   : > { %622 = vst.msk [vmem:[#allocation2 + $0x8] sm:$0xff] %vm620_vm5, %v575_v51  ;;  %588 = vrot.lane.b32.xlu1 %v1538_v47, %s1677_s24 }
  0x95   : > { %493 = vrot.lane.b32.xlu0 %v1770_v16, %s1676_s23  ;;  %v1557_v16 = vld [vmem:[%s1721_s20 + $0x9a] sm:$0xff] }
  0x96   : > { %v382_v54 = vpop.permute.xlu1 %381 }
  0x97   : > { %v287_v55 = vpop.permute.xlu0 %286  ;;  %428 = vst.msk [vmem:[#allocation2 + $0x10] sm:$0xff] %vm425_vm3, %v382_v54 }
  0x98   : > { %332 = vst.msk [vmem:[#allocation2 + $0x18] sm:$0xff] %vm328_vm2, %v287_v55  ;;  %973 = vrot.lane.b32.xlu1 %v1554_v52, %s1681_s10  ;;  %v1545_v55 = vld [vmem:[%s1721_s20 + $0xc9] sm:$0xff] }
  0x99   : > { %878 = vrot.lane.b32.xlu0 %v1539_v53, %s1680_s27 }
  0x9a   : > { %v768_v56 = vpop.permute.xlu1 %767 }
  0x9b   : > { %v672_v57 = vpop.permute.xlu0 %671  ;;  %816 = vst.msk [vmem:[#allocation2] sm:$0xff] %vm815_vm7, %v768_v56  ;;  %v1560_v56 = vld [vmem:[%s1721_s20 + $0xc2] sm:$0xff] }
  0x9c   : > { %719 = vst.msk [vmem:[#allocation2 + $0x8] sm:$0xff] %vm717_vm6, %v672_v57  ;;  %590 = vrot.lane.b32.xlu1 %v1539_v53, %s1677_s24 }
  0x9d   : > { %300 = vrot.lane.b32.xlu0 %v1538_v47, %s1675_s22 }
  0x9e   : > { %v480_v59 = vpop.permute.xlu1 %479 }
  0x9f   : > { %v384_v60 = vpop.permute.xlu0 %383  ;;  %526 = vst.msk [vmem:[#allocation2 + $0x10] sm:$0xff] %vm523_vm4, %v480_v59 }
  0xa0   : > { %429 = vst.msk [vmem:[#allocation2 + $0x18] sm:$0xff] %vm425_vm3, %v384_v60  ;;  %975 = vrot.lane.b32.xlu1 %v1555_v58, %s1681_s10 }
  0xa1   : > { %685 = vrot.lane.b32.xlu0 %v1554_v52, %s1678_s25 }
  0xa2   : > { %v865_v61 = vpop.permute.xlu1 %864 }
  0xa3   : > { %v770_v62 = vpop.permute.xlu0 %769  ;;  %913 = vst.msk [vmem:[#allocation2] sm:$0xff] %vm912_vm8, %v865_v61 }
  0xa4   : > { %817 = vst.msk [vmem:[#allocation2 + $0x8] sm:$0xff] %vm815_vm7, %v770_v62  ;;  %397 = vrot.lane.b32.xlu1 %v1554_v52, %s1674_s21  ;;  %v1561_v62 = vld [vmem:[%s1721_s20 + $0xca] sm:$0xff] }
  0xa5   : > { %302 = vrot.lane.b32.xlu0 %v1539_v53, %s1675_s22 }
  0xa6   : > { %v577_v63 = vpop.permute.xlu1 %576 }
  0xa7   : > { %v482_v0 = vpop.permute.xlu0 %481  ;;  %623 = vst.msk [vmem:[#allocation2 + $0x10] sm:$0xff] %vm620_vm5, %v577_v63 }
  0xa8   : > { %527 = vst.msk [vmem:[#allocation2 + $0x18] sm:$0xff] %vm523_vm4, %v482_v0  ;;  %783 = vrot.lane.b32.xlu1 %v1786_v20, %s1679_s26 }
  0xa9   : > { %687 = vrot.lane.b32.xlu0 %v1555_v58, %s1678_s25 }
  0xaa   : > { %v962_v1 = vpop.permute.xlu1 %961 }
  0xab   : > { %v867_v2 = vpop.permute.xlu0 %866  ;;  %1010 = vst.msk [vmem:[#allocation2] sm:$0xff] %vm1009_vm9, %v962_v1  ;;  %v1530_v1 = vld [vmem:[%s1721_s20 + $0xd8] sm:$0xff] }
  0xac   : > { %914 = vst.msk [vmem:[#allocation2 + $0x8] sm:$0xff] %vm912_vm8, %v867_v2  ;;  %495 = vrot.lane.b32.xlu1 %v1786_v20, %s1676_s23  ;;  %v1531_v2 = vld [vmem:[%s1721_s20 + $0xe0] sm:$0xff] }
  0xad   : > { %399 = vrot.lane.b32.xlu0 %v1555_v58, %s1674_s21 }
  0xae   : > { %v579_v4 = vpop.permute.xlu1 %578 }
  0xaf   : > { %v289_v5 = vpop.permute.xlu0 %288  ;;  %624 = vst.msk [vmem:[#allocation2 + $0x18] sm:$0xff] %vm620_vm5, %v579_v4 }
  0xb0   : > { %333 = vst.msk [vmem:[#allocation2 + $0x20] sm:$0xff] %vm328_vm2, %v289_v5  ;;  %880 = vrot.lane.b32.xlu1 %v1540_v3, %s1680_s27  ;;  %v1546_v5 = vld [vmem:[%s1721_s20 + $0xd9] sm:$0xff] }
  0xb1   : > { %785 = vrot.lane.b32.xlu0 %v1796_v22, %s1679_s26 }
  0xb2   : > { %v964_v6 = vpop.permute.xlu1 %963  ;;  %v1026_v8 = vld [vmem:[#allocation2] sm:$0xff] }
  0xb3   : > { %v674_v7 = vpop.permute.xlu0 %673  ;;  %1011 = vst.msk [vmem:[#allocation2 + $0x8] sm:$0xff] %vm1009_vm9, %v964_v6  ;;  %1615 = vmatprep.mubr.msk.f32.mxu0 %vm1047_vm10, %v1026_v8  ;;  %v1547_v6 = vld [vmem:[%s1721_s20 + $0xe1] sm:$0xff] }
  0xb4   : > { %720 = vst.msk [vmem:[#allocation2 + $0x10] sm:$0xff] %vm717_vm6, %v674_v7  ;;  %592 = vrot.lane.b32.xlu1 %v1540_v3, %s1677_s24 }
  0xb5   : > { %497 = vrot.lane.b32.xlu0 %v1796_v22, %s1676_s23 }
  0xb6   : > { %v386_v11 = vpop.permute.xlu1 %385 }
  0xb7   : > { %v291_v12 = vpop.permute.xlu0 %290  ;;  %430 = vst.msk [vmem:[#allocation2 + $0x20] sm:$0xff] %vm425_vm3, %v386_v11 }
  0xb8   : > { %334 = vst.msk [vmem:[#allocation2 + $0x28] sm:$0xff] %vm328_vm2, %v291_v12  ;;  %977 = vrot.lane.b32.xlu1 %v1556_v9, %s1681_s10 }
  0xb9   : > { %882 = vrot.lane.b32.xlu0 %v1541_v10, %s1680_s27 }
  0xba   : > { %v772_v13 = vpop.permute.xlu1 %771  ;;  %v1027_v15 = vld [vmem:[#allocation2 + $0x8] sm:$0xff] }
  0xbb   : > { %v676_v14 = vpop.permute.xlu0 %675  ;;  %818 = vst.msk [vmem:[#allocation2 + $0x10] sm:$0xff] %vm815_vm7, %v772_v13  ;;  %1616 = vmatmul.mubr.msk.f32.vlgmr.msra.gmra.mxu0 %vm1047_vm10, %v1027_v15 }
  0xbc   : > { %721 = vst.msk [vmem:[#allocation2 + $0x18] sm:$0xff] %vm717_vm6, %v676_v14  ;;  %594 = vrot.lane.b32.xlu1 %v1541_v10, %s1677_s24 }
  0xbd   : > { %304 = vrot.lane.b32.xlu0 %v1540_v3, %s1675_s22 }
  0xbe   : > { %v484_v17 = vpop.permute.xlu1 %483 }
  0xbf   : > { %v388_v18 = vpop.permute.xlu0 %387  ;;  %528 = vst.msk [vmem:[#allocation2 + $0x20] sm:$0xff] %vm523_vm4, %v484_v17 }
  0xc0   : > { %431 = vst.msk [vmem:[#allocation2 + $0x28] sm:$0xff] %vm425_vm3, %v388_v18  ;;  %979 = vrot.lane.b32.xlu1 %v1557_v16, %s1681_s10 }
  0xc1   : > { %689 = vrot.lane.b32.xlu0 %v1556_v9, %s1678_s25 }
  0xc2   : > { %v869_v19 = vpop.permute.xlu1 %868 }
  0xc3   : > { %v774_v20 = vpop.permute.xlu0 %773  ;;  %915 = vst.msk [vmem:[#allocation2 + $0x10] sm:$0xff] %vm912_vm8, %v869_v19 }
  0xc4   : > { %819 = vst.msk [vmem:[#allocation2 + $0x18] sm:$0xff] %vm815_vm7, %v774_v20  ;;  %401 = vrot.lane.b32.xlu1 %v1556_v9, %s1674_s21  ;;  %v1562_v9 = vld [vmem:[%s1721_s20 + $0xda] sm:$0xff] }
  0xc5   : > { %306 = vrot.lane.b32.xlu0 %v1541_v10, %s1675_s22  ;;  %v1563_v10 = vld [vmem:[%s1721_s20 + $0xe2] sm:$0xff] }
  0xc6   : > { %v581_v21 = vpop.permute.xlu1 %580 }
  0xc7   : > { %v486_v22 = vpop.permute.xlu0 %485  ;;  %625 = vst.msk [vmem:[#allocation2 + $0x20] sm:$0xff] %vm620_vm5, %v581_v21 }
  0xc8   : > { %529 = vst.msk [vmem:[#allocation2 + $0x28] sm:$0xff] %vm523_vm4, %v486_v22  ;;  %787 = vrot.lane.b32.xlu1 %v1831_v31, %s1679_s26 }
  0xc9   : > { %691 = vrot.lane.b32.xlu0 %v1557_v16, %s1678_s25 }
  0xca   : > { %v966_v23 = vpop.permute.xlu1 %965 }
  0xcb   : > { %v871_v24 = vpop.permute.xlu0 %870  ;;  %1012 = vst.msk [vmem:[#allocation2 + $0x10] sm:$0xff] %vm1009_vm9, %v966_v23 }
  0xcc   : > { %916 = vst.msk [vmem:[#allocation2 + $0x18] sm:$0xff] %vm912_vm8, %v871_v24  ;;  %499 = vrot.lane.b32.xlu1 %v1831_v31, %s1676_s23  ;;  %v1558_v31 = vld [vmem:[%s1721_s20 + $0xaa] sm:$0xff] }
  0xcd   : > { %403 = vrot.lane.b32.xlu0 %v1557_v16, %s1674_s21 }
  0xce   : > { %v583_v26 = vpop.permute.xlu1 %582 }
  0xcf   : > { %v293_v27 = vpop.permute.xlu0 %292  ;;  %626 = vst.msk [vmem:[#allocation2 + $0x28] sm:$0xff] %vm620_vm5, %v583_v26 }
  0xd0   : > { %335 = vst.msk [vmem:[#allocation2 + $0x30] sm:$0xff] %vm328_vm2, %v293_v27  ;;  %884 = vrot.lane.b32.xlu1 %v1542_v25, %s1680_s27 }
  0xd1   : > { %789 = vrot.lane.b32.xlu0 %v1843_v33, %s1679_s26 }
  0xd2   : > { %v968_v28 = vpop.permute.xlu1 %967  ;;  %v1028_v30 = vld [vmem:[#allocation2 + $0x10] sm:$0xff] }
  0xd3   : > { %v678_v29 = vpop.permute.xlu0 %677  ;;  %1013 = vst.msk [vmem:[#allocation2 + $0x18] sm:$0xff] %vm1009_vm9, %v968_v28  ;;  %1618 = vmatprep.mubr.msk.f32.mxu0 %vm1047_vm10, %v1028_v30 }
  0xd4   : > { %722 = vst.msk [vmem:[#allocation2 + $0x20] sm:$0xff] %vm717_vm6, %v678_v29  ;;  %596 = vrot.lane.b32.xlu1 %v1542_v25, %s1677_s24 }
  0xd5   : > { %501 = vrot.lane.b32.xlu0 %v1843_v33, %s1676_s23  ;;  %v1559_v33 = vld [vmem:[%s1721_s20 + $0xb2] sm:$0xff] }
  0xd6   : > { %v390_v34 = vpop.permute.xlu1 %389 }
  0xd7   : > { %v295_v35 = vpop.permute.xlu0 %294  ;;  %432 = vst.msk [vmem:[#allocation2 + $0x30] sm:$0xff] %vm425_vm3, %v390_v34 }
  0xd8   : > { %336 = vst.msk [vmem:[#allocation2 + $0x38] sm:$0xff] %vm328_vm2, %v295_v35  ;;  %981 = vrot.lane.b32.xlu1 %v1558_v31, %s1681_s10 }
  0xd9   : > { %886 = vrot.lane.b32.xlu0 %v1543_v32, %s1680_s27 }
  0xda   : > { %v776_v36 = vpop.permute.xlu1 %775  ;;  %v1029_v38 = vld [vmem:[#allocation2 + $0x18] sm:$0xff] }
  0xdb   : > { %v680_v37 = vpop.permute.xlu0 %679  ;;  %820 = vst.msk [vmem:[#allocation2 + $0x20] sm:$0xff] %vm815_vm7, %v776_v36  ;;  %1619 = vmatmul.mubr.msk.f32.gmra.mxu0 %vm1047_vm10, %v1029_v38 }
  0xdc   : > { %723 = vst.msk [vmem:[#allocation2 + $0x28] sm:$0xff] %vm717_vm6, %v680_v37  ;;  %598 = vrot.lane.b32.xlu1 %v1543_v32, %s1677_s24 }
  0xdd   : > { %308 = vrot.lane.b32.xlu0 %v1542_v25, %s1675_s22 }
  0xde   : > { %v488_v39 = vpop.permute.xlu1 %487 }
  0xdf   : > { %v392_v40 = vpop.permute.xlu0 %391  ;;  %530 = vst.msk [vmem:[#allocation2 + $0x30] sm:$0xff] %vm523_vm4, %v488_v39 }
  0xe0   : > { %433 = vst.msk [vmem:[#allocation2 + $0x38] sm:$0xff] %vm425_vm3, %v392_v40  ;;  %983 = vrot.lane.b32.xlu1 %v1559_v33, %s1681_s10 }
  0xe1   : > { %693 = vrot.lane.b32.xlu0 %v1558_v31, %s1678_s25 }
  0xe2   : > { %v873_v41 = vpop.permute.xlu1 %872 }
  0xe3   : > { %v778_v42 = vpop.permute.xlu0 %777  ;;  %917 = vst.msk [vmem:[#allocation2 + $0x20] sm:$0xff] %vm912_vm8, %v873_v41 }
  0xe4   : > { %821 = vst.msk [vmem:[#allocation2 + $0x28] sm:$0xff] %vm815_vm7, %v778_v42  ;;  %405 = vrot.lane.b32.xlu1 %v1558_v31, %s1674_s21 }
  0xe5   : > { %310 = vrot.lane.b32.xlu0 %v1543_v32, %s1675_s22 }
  0xe6   : > { %v585_v44 = vpop.permute.xlu1 %584 }
  0xe7   : > { %v490_v45 = vpop.permute.xlu0 %489  ;;  %627 = vst.msk [vmem:[#allocation2 + $0x30] sm:$0xff] %vm620_vm5, %v585_v44 }
  0xe8   : > { %531 = vst.msk [vmem:[#allocation2 + $0x38] sm:$0xff] %vm523_vm4, %v490_v45  ;;  %791 = vrot.lane.b32.xlu1 %v1528_v43, %s1679_s26 }
  0xe9   : > { %695 = vrot.lane.b32.xlu0 %v1559_v33, %s1678_s25 }
  0xea   : > { %v970_v46 = vpop.permute.xlu1 %969 }
  0xeb   : > { %v875_v47 = vpop.permute.xlu0 %874  ;;  %1014 = vst.msk [vmem:[#allocation2 + $0x20] sm:$0xff] %vm1009_vm9, %v970_v46 }
  0xec   : > { %918 = vst.msk [vmem:[#allocation2 + $0x28] sm:$0xff] %vm912_vm8, %v875_v47  ;;  %503 = vrot.lane.b32.xlu1 %v1528_v43, %s1676_s23 }
  0xed   : > { %407 = vrot.lane.b32.xlu0 %v1559_v33, %s1674_s21  ;;  %s211_s21 = scalar_lea.vmem %s2220_s3, %s2223_s16 }
  0xee   : > { %v587_v50 = vpop.permute.xlu1 %586 }
  0xef   : > { %v297_v51 = vpop.permute.xlu0 %296  ;;  %628 = vst.msk [vmem:[#allocation2 + $0x38] sm:$0xff] %vm620_vm5, %v587_v50 }
  0xf0   : > { %337 = vst.msk [vmem:[#allocation2 + $0x40] sm:$0xff] %vm328_vm2, %v297_v51  ;;  %888 = vrot.lane.b32.xlu1 %v1544_v49, %s1680_s27 }
  0xf1   : > { %793 = vrot.lane.b32.xlu0 %v1529_v48, %s1679_s26 }
  0xf2   : > { %v972_v52 = vpop.permute.xlu1 %971  ;;  %v1030_v54 = vld [vmem:[#allocation2 + $0x20] sm:$0xff] }
  0xf3   : > { %v682_v53 = vpop.permute.xlu0 %681  ;;  %1015 = vst.msk [vmem:[#allocation2 + $0x28] sm:$0xff] %vm1009_vm9, %v972_v52  ;;  %1621 = vmatprep.mubr.msk.f32.mxu0 %vm1047_vm10, %v1030_v54 }
  0xf4   : > { %724 = vst.msk [vmem:[#allocation2 + $0x30] sm:$0xff] %vm717_vm6, %v682_v53  ;;  %600 = vrot.lane.b32.xlu1 %v1544_v49, %s1677_s24 }
  0xf5   : > { %505 = vrot.lane.b32.xlu0 %v1529_v48, %s1676_s23 }
  0xf6   : > { %v394_v57 = vpop.permute.xlu1 %393 }
  0xf7   : > { %v299_v58 = vpop.permute.xlu0 %298  ;;  %434 = vst.msk [vmem:[#allocation2 + $0x40] sm:$0xff] %vm425_vm3, %v394_v57 }
  0xf8   : > { %338 = vst.msk [vmem:[#allocation2 + $0x48] sm:$0xff] %vm328_vm2, %v299_v58  ;;  %985 = vrot.lane.b32.xlu1 %v1560_v56, %s1681_s10 }
  0xf9   : > { %890 = vrot.lane.b32.xlu0 %v1545_v55, %s1680_s27 }
  0xfa   : > { %v780_v59 = vpop.permute.xlu1 %779  ;;  %v1031_v61 = vld [vmem:[#allocation2 + $0x28] sm:$0xff] }
  0xfb   : > { %v684_v60 = vpop.permute.xlu0 %683  ;;  %822 = vst.msk [vmem:[#allocation2 + $0x30] sm:$0xff] %vm815_vm7, %v780_v59  ;;  %1622 = vmatmul.mubr.msk.f32.gmra.mxu0 %vm1047_vm10, %v1031_v61 }
  0xfc   : > { %725 = vst.msk [vmem:[#allocation2 + $0x38] sm:$0xff] %vm717_vm6, %v684_v60  ;;  %697 = vrot.lane.b32.xlu1 %v1560_v56, %s1678_s25 }
  0xfd   : > { %602 = vrot.lane.b32.xlu0 %v1545_v55, %s1677_s24  ;;  %s214_s24 = scalar_lea.vmem %s2221_s4, %s2223_s16 }
  0xfe   : > { %v492_v63 = vpop.permute.xlu1 %491 }
  0xff   : > { %v396_v0 = vpop.permute.xlu0 %395  ;;  %532 = vst.msk [vmem:[#allocation2 + $0x40] sm:$0xff] %vm523_vm4, %v492_v63 }
 0x100   : > { %435 = vst.msk [vmem:[#allocation2 + $0x48] sm:$0xff] %vm425_vm3, %v396_v0  ;;  %699 = vrot.lane.b32.xlu1 %v1561_v62, %s1678_s25 }
 0x101   : > { %987 = vrot.lane.b32.xlu0 %v1561_v62, %s1681_s10 }
 0x102   : > { %v877_v3 = vpop.permute.xlu1 %876 }
 0x103   : > { %v782_v4 = vpop.permute.xlu0 %781  ;;  %919 = vst.msk [vmem:[#allocation2 + $0x30] sm:$0xff] %vm912_vm8, %v877_v3 }
 0x104   : > { %823 = vst.msk [vmem:[#allocation2 + $0x38] sm:$0xff] %vm815_vm7, %v782_v4  ;;  %797 = vrot.lane.b32.xlu1 %v1531_v2, %s1679_s26 }
 0x105   : > { %795 = vrot.lane.b32.xlu0 %v1530_v1, %s1679_s26 }
 0x106   : > { %v589_v7 = vpop.permute.xlu1 %588 }
 0x107   : > { %v494_v8 = vpop.permute.xlu0 %493  ;;  %629 = vst.msk [vmem:[#allocation2 + $0x40] sm:$0xff] %vm620_vm5, %v589_v7 }
 0x108   : > { %533 = vst.msk [vmem:[#allocation2 + $0x48] sm:$0xff] %vm523_vm4, %v494_v8  ;;  %894 = vrot.lane.b32.xlu1 %v1547_v6, %s1680_s27 }
 0x109   : > { %892 = vrot.lane.b32.xlu0 %v1546_v5, %s1680_s27 }
 0x10a   : > { %v974_v11 = vpop.permute.xlu1 %973 }
 0x10b   : > { %v879_v12 = vpop.permute.xlu0 %878  ;;  %1016 = vst.msk [vmem:[#allocation2 + $0x30] sm:$0xff] %vm1009_vm9, %v974_v11 }
 0x10c   : > { %920 = vst.msk [vmem:[#allocation2 + $0x38] sm:$0xff] %vm912_vm8, %v879_v12  ;;  %991 = vrot.lane.b32.xlu1 %v1563_v10, %s1681_s10 }
 0x10d   : > { %989 = vrot.lane.b32.xlu0 %v1562_v9, %s1681_s10 }
 0x10e   : > { %v591_v13 = vpop.permute.xlu1 %590 }
 0x10f   : > { %v301_v14 = vpop.permute.xlu0 %300  ;;  %630 = vst.msk [vmem:[#allocation2 + $0x48] sm:$0xff] %vm620_vm5, %v591_v13 }
 0x110   : > { %339 = vst.msk [vmem:[#allocation2 + $0x50] sm:$0xff] %vm328_vm2, %v301_v14 }
 0x112   : > { %v976_v15 = vpop.permute.xlu1 %975  ;;  %v1032_v17 = vld [vmem:[#allocation2 + $0x30] sm:$0xff] }
 0x113   : > { %v686_v16 = vpop.permute.xlu0 %685  ;;  %1017 = vst.msk [vmem:[#allocation2 + $0x38] sm:$0xff] %vm1009_vm9, %v976_v15  ;;  %1624 = vmatprep.mubr.msk.f32.mxu0 %vm1047_vm10, %v1032_v17 }
 0x114   : > { %726 = vst.msk [vmem:[#allocation2 + $0x40] sm:$0xff] %vm717_vm6, %v686_v16 }
 0x116   : > { %v398_v18 = vpop.permute.xlu1 %397 }
 0x117   : > { %v303_v19 = vpop.permute.xlu0 %302  ;;  %436 = vst.msk [vmem:[#allocation2 + $0x50] sm:$0xff] %vm425_vm3, %v398_v18 }
 0x118   : > { %340 = vst.msk [vmem:[#allocation2 + $0x58] sm:$0xff] %vm328_vm2, %v303_v19 }
 0x11a   : > { %v784_v20 = vpop.permute.xlu1 %783  ;;  %v1033_v22 = vld [vmem:[#allocation2 + $0x38] sm:$0xff] }
 0x11b   : > { %v688_v21 = vpop.permute.xlu0 %687  ;;  %824 = vst.msk [vmem:[#allocation2 + $0x40] sm:$0xff] %vm815_vm7, %v784_v20  ;;  %1625 = vmatmul.mubr.msk.f32.gmra.mxu0 %vm1047_vm10, %v1033_v22 }
 0x11c   : > { %727 = vst.msk [vmem:[#allocation2 + $0x48] sm:$0xff] %vm717_vm6, %v688_v21 }
 0x11e   : > { %v496_v23 = vpop.permute.xlu1 %495 }
 0x11f   : > { %v400_v24 = vpop.permute.xlu0 %399  ;;  %534 = vst.msk [vmem:[#allocation2 + $0x50] sm:$0xff] %vm523_vm4, %v496_v23 }
 0x120   : > { %437 = vst.msk [vmem:[#allocation2 + $0x58] sm:$0xff] %vm425_vm3, %v400_v24 }
 0x122   : > { %v881_v25 = vpop.permute.xlu1 %880 }
 0x123   : > { %v786_v26 = vpop.permute.xlu0 %785  ;;  %921 = vst.msk [vmem:[#allocation2 + $0x40] sm:$0xff] %vm912_vm8, %v881_v25 }
 0x124   : > { %825 = vst.msk [vmem:[#allocation2 + $0x48] sm:$0xff] %vm815_vm7, %v786_v26 }
 0x126   : > { %v593_v27 = vpop.permute.xlu1 %592 }
 0x127   : > { %v498_v28 = vpop.permute.xlu0 %497  ;;  %631 = vst.msk [vmem:[#allocation2 + $0x50] sm:$0xff] %vm620_vm5, %v593_v27 }
 0x128   : > { %535 = vst.msk [vmem:[#allocation2 + $0x58] sm:$0xff] %vm523_vm4, %v498_v28 }
 0x12a   : > { %v978_v29 = vpop.permute.xlu1 %977 }
 0x12b   : > { %v883_v30 = vpop.permute.xlu0 %882  ;;  %1018 = vst.msk [vmem:[#allocation2 + $0x40] sm:$0xff] %vm1009_vm9, %v978_v29 }
 0x12c   : > { %922 = vst.msk [vmem:[#allocation2 + $0x48] sm:$0xff] %vm912_vm8, %v883_v30 }
 0x12e   : > { %v595_v31 = vpop.permute.xlu1 %594 }
 0x12f   : > { %v305_v32 = vpop.permute.xlu0 %304  ;;  %632 = vst.msk [vmem:[#allocation2 + $0x58] sm:$0xff] %vm620_vm5, %v595_v31 }
 0x130   : > { %341 = vst.msk [vmem:[#allocation2 + $0x60] sm:$0xff] %vm328_vm2, %v305_v32 }
 0x132   : > { %v980_v34 = vpop.permute.xlu1 %979  ;;  %v1034_v36 = vld [vmem:[#allocation2 + $0x40] sm:$0xff] }
 0x133   : > { %v690_v35 = vpop.permute.xlu0 %689  ;;  %1019 = vst.msk [vmem:[#allocation2 + $0x48] sm:$0xff] %vm1009_vm9, %v980_v34  ;;  %1627 = vmatprep.mubr.msk.f32.mxu1 %vm1047_vm10, %v1034_v36 }
 0x134   : > { %728 = vst.msk [vmem:[#allocation2 + $0x50] sm:$0xff] %vm717_vm6, %v690_v35 }
 0x136   : > { %v402_v37 = vpop.permute.xlu1 %401 }
 0x137   : > { %v307_v38 = vpop.permute.xlu0 %306  ;;  %438 = vst.msk [vmem:[#allocation2 + $0x60] sm:$0xff] %vm425_vm3, %v402_v37 }
 0x138   : > { %342 = vst.msk [vmem:[#allocation2 + $0x68] sm:$0xff] %vm328_vm2, %v307_v38 }
 0x13a   : > { %v788_v33 = vpop.permute.xlu1 %787  ;;  %v1035_v40 = vld [vmem:[#allocation2 + $0x48] sm:$0xff] }
 0x13b   : > { %v692_v39 = vpop.permute.xlu0 %691  ;;  %826 = vst.msk [vmem:[#allocation2 + $0x50] sm:$0xff] %vm815_vm7, %v788_v33  ;;  %1628 = vmatmul.mubr.msk.f32.vlgmr.msra.gmra.mxu1 %vm1047_vm10, %v1035_v40 }
 0x13c   : > { %729 = vst.msk [vmem:[#allocation2 + $0x58] sm:$0xff] %vm717_vm6, %v692_v39 }
 0x13e   : > { %v500_v41 = vpop.permute.xlu1 %499 }
 0x13f   : > { %v404_v42 = vpop.permute.xlu0 %403  ;;  %536 = vst.msk [vmem:[#allocation2 + $0x60] sm:$0xff] %vm523_vm4, %v500_v41 }
 0x140   : > { %439 = vst.msk [vmem:[#allocation2 + $0x68] sm:$0xff] %vm425_vm3, %v404_v42 }
 0x142   : > { %v885_v43 = vpop.permute.xlu1 %884 }
 0x143   : > { %v790_v44 = vpop.permute.xlu0 %789  ;;  %923 = vst.msk [vmem:[#allocation2 + $0x50] sm:$0xff] %vm912_vm8, %v885_v43 }
 0x144   : > { %827 = vst.msk [vmem:[#allocation2 + $0x58] sm:$0xff] %vm815_vm7, %v790_v44 }
 0x146   : > { %v597_v45 = vpop.permute.xlu1 %596 }
 0x147   : > { %v502_v46 = vpop.permute.xlu0 %501  ;;  %633 = vst.msk [vmem:[#allocation2 + $0x60] sm:$0xff] %vm620_vm5, %v597_v45 }
 0x148   : > { %537 = vst.msk [vmem:[#allocation2 + $0x68] sm:$0xff] %vm523_vm4, %v502_v46 }
 0x14a   : > { %v982_v47 = vpop.permute.xlu1 %981 }
 0x14b   : > { %v887_v48 = vpop.permute.xlu0 %886  ;;  %1020 = vst.msk [vmem:[#allocation2 + $0x50] sm:$0xff] %vm1009_vm9, %v982_v47 }
 0x14c   : > { %924 = vst.msk [vmem:[#allocation2 + $0x58] sm:$0xff] %vm912_vm8, %v887_v48 }
 0x14e   : > { %v599_v49 = vpop.permute.xlu1 %598 }
 0x14f   : > { %v309_v50 = vpop.permute.xlu0 %308  ;;  %634 = vst.msk [vmem:[#allocation2 + $0x68] sm:$0xff] %vm620_vm5, %v599_v49 }
 0x150   : > { %343 = vst.msk [vmem:[#allocation2 + $0x70] sm:$0xff] %vm328_vm2, %v309_v50 }
 0x152   : > { %v984_v51 = vpop.permute.xlu1 %983  ;;  %v1036_v53 = vld [vmem:[#allocation2 + $0x50] sm:$0xff] }
 0x153   : > { %v694_v52 = vpop.permute.xlu0 %693  ;;  %1021 = vst.msk [vmem:[#allocation2 + $0x58] sm:$0xff] %vm1009_vm9, %v984_v51  ;;  %1630 = vmatprep.mubr.msk.f32.mxu1 %vm1047_vm10, %v1036_v53 }
 0x154   : > { %730 = vst.msk [vmem:[#allocation2 + $0x60] sm:$0xff] %vm717_vm6, %v694_v52 }
 0x156   : > { %v406_v55 = vpop.permute.xlu1 %405 }
 0x157   : > { %v311_v54 = vpop.permute.xlu0 %310  ;;  %440 = vst.msk [vmem:[#allocation2 + $0x70] sm:$0xff] %vm425_vm3, %v406_v55 }
 0x158   : > { %344 = vst.msk [vmem:[#allocation2 + $0x78] sm:$0xff] %vm328_vm2, %v311_v54 }
 0x15a   : > { %v792_v57 = vpop.permute.xlu1 %791  ;;  %v1037_v58 = vld [vmem:[#allocation2 + $0x58] sm:$0xff] }
 0x15b   : > { %v696_v56 = vpop.permute.xlu0 %695  ;;  %828 = vst.msk [vmem:[#allocation2 + $0x60] sm:$0xff] %vm815_vm7, %v792_v57  ;;  %1631 = vmatmul.mubr.msk.f32.gmra.mxu1 %vm1047_vm10, %v1037_v58 }
 0x15c   : > { %731 = vst.msk [vmem:[#allocation2 + $0x68] sm:$0xff] %vm717_vm6, %v696_v56 }
 0x15e   : > { %v504_v60 = vpop.permute.xlu1 %503 }
 0x15f   : > { %v408_v59 = vpop.permute.xlu0 %407  ;;  %538 = vst.msk [vmem:[#allocation2 + $0x70] sm:$0xff] %vm523_vm4, %v504_v60 }
 0x160   : > { %441 = vst.msk [vmem:[#allocation2 + $0x78] sm:$0xff] %vm425_vm3, %v408_v59 }
 0x162   : > { %v889_v62 = vpop.permute.xlu1 %888 }
 0x163   : > { %v794_v61 = vpop.permute.xlu0 %793  ;;  %925 = vst.msk [vmem:[#allocation2 + $0x60] sm:$0xff] %vm912_vm8, %v889_v62 }
 0x164   : > { %829 = vst.msk [vmem:[#allocation2 + $0x68] sm:$0xff] %vm815_vm7, %v794_v61 }
 0x166   : > { %v601_v0 = vpop.permute.xlu1 %600 }
 0x167   : > { %v506_v63 = vpop.permute.xlu0 %505  ;;  %635 = vst.msk [vmem:[#allocation2 + $0x70] sm:$0xff] %vm620_vm5, %v601_v0 }
 0x168   : > { %539 = vst.msk [vmem:[#allocation2 + $0x78] sm:$0xff] %vm523_vm4, %v506_v63 }
 0x16a   : > { %v986_v2 = vpop.permute.xlu1 %985 }
 0x16b   : > { %v891_v1 = vpop.permute.xlu0 %890  ;;  %1022 = vst.msk [vmem:[#allocation2 + $0x60] sm:$0xff] %vm1009_vm9, %v986_v2 }
 0x16c   : > { %926 = vst.msk [vmem:[#allocation2 + $0x68] sm:$0xff] %vm912_vm8, %v891_v1 }
 0x16e   : > { %v698_v4 = vpop.permute.xlu1 %697 }
 0x16f   : > { %v603_v3 = vpop.permute.xlu0 %602  ;;  %732 = vst.msk [vmem:[#allocation2 + $0x70] sm:$0xff] %vm717_vm6, %v698_v4 }
 0x170   : > { %636 = vst.msk [vmem:[#allocation2 + $0x78] sm:$0xff] %vm620_vm5, %v603_v3 }
 0x172   : > { %v700_v6 = vpop.permute.xlu1 %699  ;;  %v1038_v7 = vld [vmem:[#allocation2 + $0x60] sm:$0xff] }
 0x173   : > { %v988_v5 = vpop.permute.xlu0 %987  ;;  %733 = vst.msk [vmem:[#allocation2 + $0x78] sm:$0xff] %vm717_vm6, %v700_v6  ;;  %1633 = vmatprep.mubr.msk.f32.mxu1 %vm1047_vm10, %v1038_v7 }
 0x174   : > { %1023 = vst.msk [vmem:[#allocation2 + $0x68] sm:$0xff] %vm1009_vm9, %v988_v5 }
 0x176   : > { %v798_v9 = vpop.permute.xlu1 %797 }
 0x177   : > { %v796_v8 = vpop.permute.xlu0 %795  ;;  %831 = vst.msk [vmem:[#allocation2 + $0x78] sm:$0xff] %vm815_vm7, %v798_v9 }
 0x178   : > { %830 = vst.msk [vmem:[#allocation2 + $0x70] sm:$0xff] %vm815_vm7, %v796_v8 }
 0x17a   : > { %v895_v11 = vpop.permute.xlu1 %894 }
 0x17b   : > { %v893_v10 = vpop.permute.xlu0 %892  ;;  %v1039_v12 = vld [vmem:[#allocation2 + $0x68] sm:$0xff]  ;;  %928 = vst.msk [vmem:[#allocation2 + $0x78] sm:$0xff] %vm912_vm8, %v895_v11  ;;  %v1617_v13 = vpop.f32.mrf.mxu0 }
 0x17c   : > { %927 = vst.msk [vmem:[#allocation2 + $0x70] sm:$0xff] %vm912_vm8, %v893_v10  ;;  %1634 = vmatmul.mubr.msk.f32.gmra.mxu1 %vm1047_vm10, %v1039_v12  ;;  %v1263_v14 = vsel %vm1245_vm11, %v1617_v13, 0.0  ;;  %v1302_v15 = vmul.f32 %v1617_v13, %v1617_v13 }
 0x17d   : > { %1247 = vst.msk [vmem:[%s2133_s18 + $0x8] sm:$0xff] %vm1245_vm11, %v1617_v13  ;;  %v1166_v16 = vpop.f32.mrf.mxu0 }
 0x17e   : > { %v1318_v17 = vsel %vm1245_vm11, %v1302_v15, 0.0  ;;  %1246 = vst.msk [vmem:[%s2133_s18] sm:$0xff] %vm1245_vm11, %v1166_v16  ;;  %v1262_v18 = vsel %vm1245_vm11, %v1166_v16, 0.0  ;;  %v1301_v19 = vmul.f32 %v1166_v16, %v1166_v16  ;;  %v992_v21 = vpop.permute.xlu1 %991 }
 0x17f   : > { %v990_v20 = vpop.permute.xlu0 %989  ;;  %v1264_v22 = vadd.f32 %v1263_v14, %v1262_v18  ;;  %1025 = vst.msk [vmem:[#allocation2 + $0x78] sm:$0xff] %vm1009_vm9, %v992_v21 }
 0x180   : > { %1024 = vst.msk [vmem:[#allocation2 + $0x70] sm:$0xff] %vm1009_vm9, %v990_v20  ;;  %v1317_v23 = vsel %vm1245_vm11, %v1301_v19, 0.0 }
 0x181   : > { %v1319_v24 = vadd.f32 %v1318_v17, %v1317_v23 }
 0x186   : > { %v1041_v26 = vld [vmem:[#allocation2 + $0x78] sm:$0xff] }
 0x187   : > { %v1040_v25 = vld [vmem:[#allocation2 + $0x70] sm:$0xff] }
 0x188   : > { %1636 = vmatprep.mubr.msk.f32.mxu1 %vm1047_vm10, %v1040_v25 }
 0x189   : > { %1637 = vmatmul.mubr.msk.f32.gmra.mxu1 %vm1047_vm10, %v1041_v26 }
 0x19b   : > { %v1620_v27 = vpop.f32.mrf.mxu0 }
 0x19c   : > { %1249 = vst.msk [vmem:[%s2133_s18 + $0x18] sm:$0xff] %vm1245_vm11, %v1620_v27  ;;  %v1304_v29 = vmul.f32 %v1620_v27, %v1620_v27  ;;  %v1267_v34 = vsel %vm1245_vm11, %v1620_v27, 0.0 }
 0x19d   : > { %v1176_v28 = vpop.f32.mrf.mxu0 }
 0x19e   : > { %1248 = vst.msk [vmem:[%s2133_s18 + $0x10] sm:$0xff] %vm1245_vm11, %v1176_v28  ;;  %v1265_v30 = vsel %vm1245_vm11, %v1176_v28, 0.0  ;;  %v1303_v31 = vmul.f32 %v1176_v28, %v1176_v28  ;;  %v1322_v38 = vsel %vm1245_vm11, %v1304_v29, 0.0 }
 0x19f   : > { %v1266_v32 = vadd.f32 %v1265_v30, %v1264_v22 }
 0x1a0   : > { %v1320_v35 = vsel %vm1245_vm11, %v1303_v31, 0.0 }
 0x1a1   : > { %v1321_v36 = vadd.f32 %v1320_v35, %v1319_v24  ;;  %v1268_v37 = vadd.f32 %v1267_v34, %v1266_v32 }
 0x1a3   : > { %v1323_v33 = vadd.f32 %v1322_v38, %v1321_v36 }
 0x1bb   : > { %v1623_v39 = vpop.f32.mrf.mxu0 }
 0x1bc   : > { %1251 = vst.msk [vmem:[%s2133_s18 + $0x28] sm:$0xff] %vm1245_vm11, %v1623_v39  ;;  %v1306_v41 = vmul.f32 %v1623_v39, %v1623_v39  ;;  %v1271_v45 = vsel %vm1245_vm11, %v1623_v39, 0.0 }
 0x1bd   : > { %v1186_v40 = vpop.f32.mrf.mxu0 }
 0x1be   : > { %1250 = vst.msk [vmem:[%s2133_s18 + $0x20] sm:$0xff] %vm1245_vm11, %v1186_v40  ;;  %v1269_v42 = vsel %vm1245_vm11, %v1186_v40, 0.0  ;;  %v1305_v43 = vmul.f32 %v1186_v40, %v1186_v40  ;;  %v1326_v49 = vsel %vm1245_vm11, %v1306_v41, 0.0 }
 0x1bf   : > { %v1270_v44 = vadd.f32 %v1269_v42, %v1268_v37 }
 0x1c0   : > { %v1324_v46 = vsel %vm1245_vm11, %v1305_v43, 0.0 }
 0x1c1   : > { %v1325_v47 = vadd.f32 %v1324_v46, %v1323_v33  ;;  %v1272_v48 = vadd.f32 %v1271_v45, %v1270_v44 }
 0x1c3   : > { %v1327_v50 = vadd.f32 %v1326_v49, %v1325_v47 }
 0x1db   : > { %v1626_v51 = vpop.f32.mrf.mxu0 }
 0x1dc   : > { %1253 = vst.msk [vmem:[%s2133_s18 + $0x38] sm:$0xff] %vm1245_vm11, %v1626_v51  ;;  %v1308_v53 = vmul.f32 %v1626_v51, %v1626_v51  ;;  %v1275_v57 = vsel %vm1245_vm11, %v1626_v51, 0.0 }
 0x1dd   : > { %v1196_v52 = vpop.f32.mrf.mxu0 }
 0x1de   : > { %1252 = vst.msk [vmem:[%s2133_s18 + $0x30] sm:$0xff] %vm1245_vm11, %v1196_v52  ;;  %v1273_v54 = vsel %vm1245_vm11, %v1196_v52, 0.0  ;;  %v1307_v55 = vmul.f32 %v1196_v52, %v1196_v52  ;;  %v1330_v61 = vsel %vm1245_vm11, %v1308_v53, 0.0 }
 0x1df   : > { %v1274_v56 = vadd.f32 %v1273_v54, %v1272_v48 }
 0x1e0   : > { %v1328_v58 = vsel %vm1245_vm11, %v1307_v55, 0.0 }
 0x1e1   : > { %v1276_v59 = vadd.f32 %v1275_v57, %v1274_v56  ;;  %v1329_v60 = vadd.f32 %v1328_v58, %v1327_v50 }
 0x1e3   : > { %v1331_v62 = vadd.f32 %v1330_v61, %v1329_v60 }
 0x1fb   : > { %v1629_v63 = vpop.f32.mrf.mxu1 }
 0x1fc   : > { %1255 = vst.msk [vmem:[%s2133_s18 + $0x48] sm:$0xff] %vm1245_vm11, %v1629_v63  ;;  %v1310_v1 = vmul.f32 %v1629_v63, %v1629_v63  ;;  %v1279_v5 = vsel %vm1245_vm11, %v1629_v63, 0.0 }
 0x1fd   : > { %v1206_v0 = vpop.f32.mrf.mxu1 }
 0x1fe   : > { %1254 = vst.msk [vmem:[%s2133_s18 + $0x40] sm:$0xff] %vm1245_vm11, %v1206_v0  ;;  %v1277_v2 = vsel %vm1245_vm11, %v1206_v0, 0.0  ;;  %v1309_v3 = vmul.f32 %v1206_v0, %v1206_v0  ;;  %v1334_v9 = vsel %vm1245_vm11, %v1310_v1, 0.0 }
 0x1ff   : > { %v1278_v4 = vadd.f32 %v1277_v2, %v1276_v59 }
 0x200   : > { %v1332_v6 = vsel %vm1245_vm11, %v1309_v3, 0.0 }
 0x201   : > { %v1333_v7 = vadd.f32 %v1332_v6, %v1331_v62  ;;  %v1280_v8 = vadd.f32 %v1279_v5, %v1278_v4 }
 0x203   : > { %v1335_v10 = vadd.f32 %v1334_v9, %v1333_v7 }
 0x21b   : > { %v1632_v11 = vpop.f32.mrf.mxu1 }
 0x21c   : > { %1257 = vst.msk [vmem:[%s2133_s18 + $0x58] sm:$0xff] %vm1245_vm11, %v1632_v11  ;;  %v1312_v19 = vmul.f32 %v1632_v11, %v1632_v11  ;;  %v1283_v22 = vsel %vm1245_vm11, %v1632_v11, 0.0 }
 0x21d   : > { %v1216_v12 = vpop.f32.mrf.mxu1 }
 0x21e   : > { %1256 = vst.msk [vmem:[%s2133_s18 + $0x50] sm:$0xff] %vm1245_vm11, %v1216_v12  ;;  %v1311_v13 = vmul.f32 %v1216_v12, %v1216_v12  ;;  %v1281_v15 = vsel %vm1245_vm11, %v1216_v12, 0.0  ;;  %v1338_v25 = vsel %vm1245_vm11, %v1312_v19, 0.0 }
 0x21f   : > { %v1282_v18 = vadd.f32 %v1281_v15, %v1280_v8 }
 0x220   : > { %v1336_v17 = vsel %vm1245_vm11, %v1311_v13, 0.0 }
 0x221   : > { %v1337_v21 = vadd.f32 %v1336_v17, %v1335_v10  ;;  %v1284_v24 = vadd.f32 %v1283_v22, %v1282_v18 }
 0x223   : > { %v1339_v28 = vadd.f32 %v1338_v25, %v1337_v21 }
 0x23c   : > { %v1635_v14 = vpop.f32.mrf.mxu1 }
 0x23d   : > { %1259 = vst.msk [vmem:[%s2133_s18 + $0x68] sm:$0xff] %vm1245_vm11, %v1635_v14  ;;  %v1314_v29 = vmul.f32 %v1635_v14, %v1635_v14  ;;  %v1287_v32 = vsel %vm1245_vm11, %v1635_v14, 0.0 }
 0x23e   : > { %v1226_v16 = vpop.f32.mrf.mxu1 }
 0x23f   : > { %1258 = vst.msk [vmem:[%s2133_s18 + $0x60] sm:$0xff] %vm1245_vm11, %v1226_v16  ;;  %v1313_v20 = vmul.f32 %v1226_v16, %v1226_v16  ;;  %v1285_v23 = vsel %vm1245_vm11, %v1226_v16, 0.0  ;;  %v1342_v36 = vsel %vm1245_vm11, %v1314_v29, 0.0 }
 0x240   : > { %v1286_v27 = vadd.f32 %v1285_v23, %v1284_v24 }
 0x241   : > { %v1340_v26 = vsel %vm1245_vm11, %v1313_v20, 0.0 }
 0x242   : > { %v1341_v30 = vadd.f32 %v1340_v26, %v1339_v28  ;;  %v1288_v35 = vadd.f32 %v1287_v32, %v1286_v27 }
 0x244   : > { %v1343_v40 = vadd.f32 %v1342_v36, %v1341_v30 }
 0x249   : > { %v1638_v31 = vpop.f32.mrf.mxu1 }
 0x24a   : > { %1261 = vst.msk [vmem:[%s2133_s18 + $0x78] sm:$0xff] %vm1245_vm11, %v1638_v31  ;;  %v1316_v37 = vmul.f32 %v1638_v31, %v1638_v31  ;;  %v1291_v41 = vsel %vm1245_vm11, %v1638_v31, 0.0 }
 0x24b   : > { %v1236_v34 = vpop.f32.mrf.mxu1 }
 0x24c   : > { %1260 = vst.msk [vmem:[%s2133_s18 + $0x70] sm:$0xff] %vm1245_vm11, %v1236_v34  ;;  %v1289_v38 = vsel %vm1245_vm11, %v1236_v34, 0.0  ;;  %v1315_v33 = vmul.f32 %v1236_v34, %v1236_v34  ;;  %v1346_v45 = vsel %vm1245_vm11, %v1316_v37, 0.0 }
 0x24d   : > { %v1290_v39 = vadd.f32 %v1289_v38, %v1288_v35 }
 0x24e   : > { %v1344_v42 = vsel %vm1245_vm11, %v1315_v33, 0.0 }
 0x24f   : > { %v1292_v43 = vadd.f32 %v1291_v41, %v1290_v39  ;;  %v1345_v44 = vadd.f32 %v1344_v42, %v1343_v40 }
 0x251   : > { %v1293_v46 = vrot.slane %v1292_v43, 4  ;;  %v1347_v47 = vadd.f32 %v1346_v45, %v1345_v44 }
 0x253   : > { %v1294_v48 = vadd.f32 %v1293_v46, %v1292_v43  ;;  %v1348_v49 = vrot.slane %v1347_v47, 4 }
 0x255   : > { %v1295_v50 = vrot.slane %v1294_v48, 2  ;;  %v1349_v51 = vadd.f32 %v1348_v49, %v1347_v47 }
 0x257   : > { %v1296_v52 = vadd.f32 %v1295_v50, %v1294_v48  ;;  %v1350_v53 = vrot.slane %v1349_v51, 2 }
 0x259   : > { %v1297_v54 = vrot.slane %v1296_v52, 1  ;;  %v1351_v55 = vadd.f32 %v1350_v53, %v1349_v51 }
 0x25b   : > { %v1298_v56 = vadd.f32 %v1297_v54, %v1296_v52  ;;  %v1352_v57 = vrot.slane %v1351_v55, 1 }
 0x25d   : > { %1300 = vst.msk [vmem:[%s211_s21] sm:$0x1] %vm1299_vm12, %v1298_v56  ;;  %v1353_v58 = vadd.f32 %v1352_v57, %v1351_v55 }
 0x25f   : > { %1354 = vst.msk [vmem:[%s214_s24] sm:$0x1] %vm1299_vm12, %v1353_v58 }
 0x260 PF: > { %s15_s15 = sadd.s32 1, %s1672_s15  }
 0x261   : > { %p12_p4 = scmp.ge.s32.totalorder %s15_s15, 6  }
 0x263   :  { %14 = sbr.rel (!%p12_p4) target bundleno = 1 (0x1), region = 84 }

</bundles_post_ra>
